<compile_context>
chip_gen: v7x
topology: tpu7x:2x2x1
jax: 0.10.0
libtpu: 0.0.40
codegen_flags: <defaults>
</compile_context>

<pallas_src>
import jax
import jax.numpy as jnp
from jax.experimental import pallas as pl
from jax.experimental.pallas import tpu as pltpu

F_IN = 96        # input node-feature width
F_HID = 80       # hidden width of every residual block
F_OUT = 48       # conv_mix output width
F_IN_P = 128     # 96  -> 128 (lane padded)
F_HID_P = 128    # 80  -> 128
F_OUT_P = 128    # 48  -> 128
N_BLOCKS = 7
BN_EPS = 1e-5


# ----------------------------------------------------------------------------
# Fused Pallas kernel: 7 residual blocks + conv_mix, everything VMEM-resident
# ----------------------------------------------------------------------------
def graph_resnet_kernel(p_ref, x0_ref, wb_ref, bb_ref, wmh_ref, wmx_ref,
                        bm_ref, out_ref):
    """wb_ref: (7, 128, 256)  per-layer [conv(BN-folded) | skip] weights
       bb_ref: (7, 1, 256)    matching biases
       wmh/wmx: mix weights for the hidden / original-input halves of cat().
    """
    p = p_ref[...]
    x0 = x0_ref[...]
    x = x0
    for i in range(N_BLOCKS):                    # static unroll (7 layers)
        h = jnp.dot(x, wb_ref[i], preferred_element_type=jnp.float32)
        h = jnp.dot(p, h, preferred_element_type=jnp.float32) + bb_ref[i]
        conv = jnp.maximum(h[:, :F_HID_P], 0.0)  # BN folded into w/b; ReLU
        # TODO(synk): F.dropout with training=True would need pltpu.prng_*;
        # the module is executed in eval mode here so dropout is the identity.
        skip = h[:, F_HID_P:]
        x = conv + skip
    # conv_mix over cat(x, x0): split-weight matmuls, no concat materialized.
    m = (jnp.dot(x, wmh_ref[...], preferred_element_type=jnp.float32)
         + jnp.dot(x0, wmx_ref[...], preferred_element_type=jnp.float32))
    out_ref[...] = (jnp.dot(p, m, preferred_element_type=jnp.float32)
                    + bm_ref[...])


# ----------------------------------------------------------------------------
# Wrapper / parameter packing
# ----------------------------------------------------------------------------
def _full_spec(shape):
    n = len(shape)
    return pl.BlockSpec(shape, lambda i, n=n: (0,) * n)


def _pad2d(a, rows, cols):
    out = jnp.zeros((rows, cols), a.dtype)
    return out.at[:a.shape[0], :a.shape[1]].set(a)


def pack_params(raw):
    """Fold BN into conv weights, merge conv/skip per layer, pad to 128 lanes."""
    wbs, bbs = [], []
    for i in range(1, N_BLOCKS + 1):
        blk = raw[f"block{i}"]
        scale = blk["gamma"] / jnp.sqrt(blk["var"] + BN_EPS)
        shift = blk["beta"] - blk["mean"] * scale
        wc = blk["wc"] * scale[None, :]          # fold BN (conv branch only)
        bc = blk["bc"] * scale + shift
        w = jnp.zeros((F_HID_P, 2 * F_HID_P), jnp.float32)
        w = w.at[:wc.shape[0], :F_HID].set(wc)
        w = w.at[:blk["ws"].shape[0], F_HID_P:F_HID_P + F_HID].set(blk["ws"])
        b = jnp.zeros((1, 2 * F_HID_P), jnp.float32)
        b = b.at[0, :F_HID].set(bc)
        b = b.at[0, F_HID_P:F_HID_P + F_HID].set(blk["bs"])
        wbs.append(w)
        bbs.append(b)
    wm, bm = raw["mix"]["w"], raw["mix"]["b"]    # (176, 48), (48,)
    return dict(
        wb=jnp.stack(wbs),                       # (7, 128, 256)
        bb=jnp.stack(bbs),                       # (7, 1, 256)
        wmh=_pad2d(wm[:F_HID], F_HID_P, F_OUT_P),
        wmx=_pad2d(wm[F_HID:], F_IN_P, F_OUT_P),
        bm=_pad2d(bm.reshape(1, -1), 1, F_OUT_P),
    )


def build_propagation_matrix(edge_index, num_nodes, num_edges):
    node_idx, hedge_idx = edge_index[0], edge_index[1]
    H = jnp.zeros((num_nodes, num_edges), jnp.float32)
    H = H.at[node_idx, hedge_idx].set(1.0)
    D = H.sum(axis=1)                            # node degrees (weights = 1)
    B = H.sum(axis=0)                            # hyperedge degrees
    D_inv = jnp.where(D > 0, 1.0 / D, 0.0)
    B_inv = jnp.where(B > 0, 1.0 / B, 0.0)
    return (D_inv[:, None] * H) @ (B_inv[:, None] * H.T)   # P = D^-1 H B H^T


def graph_resnet_forward(raw_params, x, edge_index, num_edges):
    """Pallas forward pass.  x: (N, 96) node features -> (N, 48)."""
    n = x.shape[0]
    n_pad = -(-n // 8) * 8                       # sublane-align node count
    P = build_propagation_matrix(edge_index, n, num_edges)
    P_pad = _pad2d(P, n_pad, n_pad)
    x0_pad = _pad2d(x.astype(jnp.float32), n_pad, F_IN_P)
    pk = pack_params(raw_params)

    args = (P_pad, x0_pad, pk["wb"], pk["bb"], pk["wmh"], pk["wmx"], pk["bm"])
    out = pl.pallas_call(
        graph_resnet_kernel,
        out_shape=jax.ShapeDtypeStruct((n_pad, F_OUT_P), jnp.float32),
        grid=(1,),
        in_specs=[_full_spec(a.shape) for a in args],
        out_specs=_full_spec((n_pad, F_OUT_P)),
        compiler_params=pltpu.CompilerParams(
            dimension_semantics=("arbitrary",)),
    )(*args)
    # TODO(synk): for large graphs, row-tile P over a grid (and/or use the
    # factored H / H^T form) so the kernel stays within v7x's smaller VMEM.
    return out[:n, :F_OUT]


# ----------------------------------------------------------------------------
# Deterministic parameter init (torch-like raw params) + pure-JAX reference
# ----------------------------------------------------------------------------
def glorot(key, fan_in, fan_out):
    limit = jnp.sqrt(6.0 / (fan_in + fan_out))
    return jax.random.uniform(key, (fan_in, fan_out), jnp.float32,
                              minval=-limit, maxval=limit)


def init_params(key):
    params = {}
    dims_in = [F_IN] + [F_HID] * (N_BLOCKS - 1)
    keys = jax.random.split(key, 6 * N_BLOCKS + 1)
    k = iter(keys)
    for i, f_in in enumerate(dims_in, start=1):
        params[f"block{i}"] = dict(
            wc=glorot(next(k), f_in, F_HID),
            bc=jnp.zeros((F_HID,), jnp.float32),
            ws=glorot(next(k), f_in, F_HID),
            bs=jnp.zeros((F_HID,), jnp.float32),
            # non-trivial BN running stats so the BN-folding path is exercised
            gamma=jax.random.uniform(next(k), (F_HID,), jnp.float32, 0.5, 1.5),
            beta=0.1 * jax.random.normal(next(k), (F_HID,), jnp.float32),
            mean=0.1 * jax.random.normal(next(k), (F_HID,), jnp.float32),
            var=jax.random.uniform(next(k), (F_HID,), jnp.float32, 0.5, 1.5),
        )
    params["mix"] = dict(w=glorot(next(k), F_HID + F_IN, F_OUT),
                         b=jnp.zeros((F_OUT,), jnp.float32))
    return params


def reference_forward(raw_params, x, edge_index, num_edges):
    """Unfused, unpadded pure-JAX reference of the torch forward (eval mode)."""
    n = x.shape[0]
    P = build_propagation_matrix(edge_index, n, num_edges)
    x0 = x
    for i in range(1, N_BLOCKS + 1):
        blk = raw_params[f"block{i}"]
        conv = P @ (x @ blk["wc"]) + blk["bc"]
        conv = ((conv - blk["mean"]) / jnp.sqrt(blk["var"] + BN_EPS)
                * blk["gamma"] + blk["beta"])
        conv = jnp.maximum(conv, 0.0)            # dropout = identity (eval)
        skip = P @ (x @ blk["ws"]) + blk["bs"]
        x = conv + skip
    xcat = jnp.concatenate([x, x0], axis=1)      # (N, 176)
    return P @ (xcat @ raw_params["mix"]["w"]) + raw_params["mix"]["b"]


# ----------------------------------------------------------------------------
if __name__ == "__main__":
    key = jax.random.PRNGKey(0)
    k_x, k_n, k_e, k_p = jax.random.split(key, 4)

    num_nodes, num_hyperedges, nnz = 16, 8, 32
    x = jax.random.normal(k_x, (num_nodes, F_IN), jnp.float32)
    node_idx = jax.random.randint(k_n, (nnz,), 0, num_nodes)
    hedge_idx = jax.random.randint(k_e, (nnz,), 0, num_hyperedges)
    edge_index = jnp.stack([node_idx, hedge_idx], axis=0)    # (2, nnz)

    raw_params = init_params(k_p)

    out = graph_resnet_forward(raw_params, x, edge_index, num_hyperedges)
    out = jax.block_until_ready(out)
    assert out.shape == (num_nodes, F_OUT) and out.dtype == jnp.float32

    ref = reference_forward(raw_params, x, edge_index, num_hyperedges)
    max_err = float(jnp.max(jnp.abs(out - ref)))
    assert max_err < 1e-3, f"mismatch vs reference: {max_err}"
    print("KERNEL_OK")
</pallas_src>

<mosaic_0001>
module attributes {stable_mosaic.version = 11 : i64} {
  func.func @graph_resnet_kernel(%arg0: i32, %arg1: memref<16x16xf32, #tpu.memory_space<vmem>>, %arg2: memref<16x128xf32, #tpu.memory_space<vmem>>, %arg3: memref<7x128x256xf32, #tpu.memory_space<vmem>>, %arg4: memref<7x1x256xf32, #tpu.memory_space<vmem>>, %arg5: memref<128x128xf32, #tpu.memory_space<vmem>>, %arg6: memref<128x128xf32, #tpu.memory_space<vmem>>, %arg7: memref<1x128xf32, #tpu.memory_space<vmem>>, %arg8: memref<16x128xf32, #tpu.memory_space<vmem>>) attributes {dimension_semantics = [#tpu.dimension_semantics<arbitrary>], iteration_bounds = array<i64: 1>, scalar_prefetch = 0 : i64, scratch_operands = 0 : i64, tpu.core_type = #tpu.core_type<tc>, window_params = [{pipeline_mode = #tpu.pipeline_mode<synchronous>, transform_indices = @transform_0, window_bounds = array<i64: 16, 16>}, {pipeline_mode = #tpu.pipeline_mode<synchronous>, transform_indices = @transform_1, window_bounds = array<i64: 16, 128>}, {pipeline_mode = #tpu.pipeline_mode<synchronous>, transform_indices = @transform_2, window_bounds = array<i64: 7, 128, 256>}, {pipeline_mode = #tpu.pipeline_mode<synchronous>, transform_indices = @transform_3, window_bounds = array<i64: 7, 1, 256>}, {pipeline_mode = #tpu.pipeline_mode<synchronous>, transform_indices = @transform_4, window_bounds = array<i64: 128, 128>}, {pipeline_mode = #tpu.pipeline_mode<synchronous>, transform_indices = @transform_5, window_bounds = array<i64: 128, 128>}, {pipeline_mode = #tpu.pipeline_mode<synchronous>, transform_indices = @transform_6, window_bounds = array<i64: 1, 128>}, {pipeline_mode = #tpu.pipeline_mode<synchronous>, transform_indices = @transform_7, window_bounds = array<i64: 16, 128>}]} {
    %c0 = arith.constant 0 : index
    %c0_0 = arith.constant 0 : index
    %0 = vector.load %arg1[%c0, %c0_0] : memref<16x16xf32, #tpu.memory_space<vmem>>, vector<16x16xf32>
    %c0_1 = arith.constant 0 : index
    %c0_2 = arith.constant 0 : index
    %1 = vector.load %arg2[%c0_1, %c0_2] : memref<16x128xf32, #tpu.memory_space<vmem>>, vector<16x128xf32>
    %c0_3 = arith.constant 0 : index
    %c0_4 = arith.constant 0 : index
    %c0_5 = arith.constant 0 : index
    %2 = vector.load %arg3[%c0_3, %c0_4, %c0_5] : memref<7x128x256xf32, #tpu.memory_space<vmem>>, vector<1x128x256xf32>
    %3 = vector.shape_cast %2 : vector<1x128x256xf32> to vector<128x256xf32>
    %cst = arith.constant dense<0.000000e+00> : vector<16x256xf32>
    %4 = tpu.matmul %1, %3, %cst {dimension_numbers = #tpu.dot_dimension_numbers<[1], [0], [0], [1], [0, 0, 1, 1], [], []>} : vector<16x128xf32>, vector<128x256xf32>, vector<16x256xf32> -> vector<16x256xf32>
    %cst_6 = arith.constant dense<0.000000e+00> : vector<16x256xf32>
    %5 = tpu.matmul %0, %4, %cst_6 {dimension_numbers = #tpu.dot_dimension_numbers<[1], [0], [0], [1], [0, 0, 1, 1], [], []>} : vector<16x16xf32>, vector<16x256xf32>, vector<16x256xf32> -> vector<16x256xf32>
    %c0_7 = arith.constant 0 : index
    %c0_8 = arith.constant 0 : index
    %c0_9 = arith.constant 0 : index
    %6 = vector.load %arg4[%c0_7, %c0_8, %c0_9] : memref<7x1x256xf32, #tpu.memory_space<vmem>>, vector<1x1x256xf32>
    %7 = vector.shape_cast %6 : vector<1x1x256xf32> to vector<1x256xf32>
    %8 = vector.broadcast %7 : vector<1x256xf32> to vector<16x256xf32>
    %9 = arith.addf %5, %8 : vector<16x256xf32>
    %10 = vector.extract_strided_slice %9 {offsets = [0, 0], sizes = [16, 128], strides = [1, 1]} : vector<16x256xf32> to vector<16x128xf32>
    %cst_10 = arith.constant 0.000000e+00 : f32
    %11 = vector.broadcast %cst_10 : f32 to vector<16x128xf32>
    %12 = arith.maximumf %10, %11 : vector<16x128xf32>
    %13 = vector.extract_strided_slice %9 {offsets = [0, 128], sizes = [16, 128], strides = [1, 1]} : vector<16x256xf32> to vector<16x128xf32>
    %14 = arith.addf %12, %13 : vector<16x128xf32>
    %c1 = arith.constant 1 : index
    %c0_11 = arith.constant 0 : index
    %c0_12 = arith.constant 0 : index
    %15 = vector.load %arg3[%c1, %c0_11, %c0_12] : memref<7x128x256xf32, #tpu.memory_space<vmem>>, vector<1x128x256xf32>
    %16 = vector.shape_cast %15 : vector<1x128x256xf32> to vector<128x256xf32>
    %cst_13 = arith.constant dense<0.000000e+00> : vector<16x256xf32>
    %17 = tpu.matmul %14, %16, %cst_13 {dimension_numbers = #tpu.dot_dimension_numbers<[1], [0], [0], [1], [0, 0, 1, 1], [], []>} : vector<16x128xf32>, vector<128x256xf32>, vector<16x256xf32> -> vector<16x256xf32>
    %cst_14 = arith.constant dense<0.000000e+00> : vector<16x256xf32>
    %18 = tpu.matmul %0, %17, %cst_14 {dimension_numbers = #tpu.dot_dimension_numbers<[1], [0], [0], [1], [0, 0, 1, 1], [], []>} : vector<16x16xf32>, vector<16x256xf32>, vector<16x256xf32> -> vector<16x256xf32>
    %c1_15 = arith.constant 1 : index
    %c0_16 = arith.constant 0 : index
    %c0_17 = arith.constant 0 : index
    %19 = vector.load %arg4[%c1_15, %c0_16, %c0_17] : memref<7x1x256xf32, #tpu.memory_space<vmem>>, vector<1x1x256xf32>
    %20 = vector.shape_cast %19 : vector<1x1x256xf32> to vector<1x256xf32>
    %21 = vector.broadcast %20 : vector<1x256xf32> to vector<16x256xf32>
    %22 = arith.addf %18, %21 : vector<16x256xf32>
    %23 = vector.extract_strided_slice %22 {offsets = [0, 0], sizes = [16, 128], strides = [1, 1]} : vector<16x256xf32> to vector<16x128xf32>
    %cst_18 = arith.constant 0.000000e+00 : f32
    %24 = vector.broadcast %cst_18 : f32 to vector<16x128xf32>
    %25 = arith.maximumf %23, %24 : vector<16x128xf32>
    %26 = vector.extract_strided_slice %22 {offsets = [0, 128], sizes = [16, 128], strides = [1, 1]} : vector<16x256xf32> to vector<16x128xf32>
    %27 = arith.addf %25, %26 : vector<16x128xf32>
    %c2 = arith.constant 2 : index
    %c0_19 = arith.constant 0 : index
    %c0_20 = arith.constant 0 : index
    %28 = vector.load %arg3[%c2, %c0_19, %c0_20] : memref<7x128x256xf32, #tpu.memory_space<vmem>>, vector<1x128x256xf32>
    %29 = vector.shape_cast %28 : vector<1x128x256xf32> to vector<128x256xf32>
    %cst_21 = arith.constant dense<0.000000e+00> : vector<16x256xf32>
    %30 = tpu.matmul %27, %29, %cst_21 {dimension_numbers = #tpu.dot_dimension_numbers<[1], [0], [0], [1], [0, 0, 1, 1], [], []>} : vector<16x128xf32>, vector<128x256xf32>, vector<16x256xf32> -> vector<16x256xf32>
    %cst_22 = arith.constant dense<0.000000e+00> : vector<16x256xf32>
    %31 = tpu.matmul %0, %30, %cst_22 {dimension_numbers = #tpu.dot_dimension_numbers<[1], [0], [0], [1], [0, 0, 1, 1], [], []>} : vector<16x16xf32>, vector<16x256xf32>, vector<16x256xf32> -> vector<16x256xf32>
    %c2_23 = arith.constant 2 : index
    %c0_24 = arith.constant 0 : index
    %c0_25 = arith.constant 0 : index
    %32 = vector.load %arg4[%c2_23, %c0_24, %c0_25] : memref<7x1x256xf32, #tpu.memory_space<vmem>>, vector<1x1x256xf32>
    %33 = vector.shape_cast %32 : vector<1x1x256xf32> to vector<1x256xf32>
    %34 = vector.broadcast %33 : vector<1x256xf32> to vector<16x256xf32>
    %35 = arith.addf %31, %34 : vector<16x256xf32>
    %36 = vector.extract_strided_slice %35 {offsets = [0, 0], sizes = [16, 128], strides = [1, 1]} : vector<16x256xf32> to vector<16x128xf32>
    %cst_26 = arith.constant 0.000000e+00 : f32
    %37 = vector.broadcast %cst_26 : f32 to vector<16x128xf32>
    %38 = arith.maximumf %36, %37 : vector<16x128xf32>
    %39 = vector.extract_strided_slice %35 {offsets = [0, 128], sizes = [16, 128], strides = [1, 1]} : vector<16x256xf32> to vector<16x128xf32>
    %40 = arith.addf %38, %39 : vector<16x128xf32>
    %c3 = arith.constant 3 : index
    %c0_27 = arith.constant 0 : index
    %c0_28 = arith.constant 0 : index
    %41 = vector.load %arg3[%c3, %c0_27, %c0_28] : memref<7x128x256xf32, #tpu.memory_space<vmem>>, vector<1x128x256xf32>
    %42 = vector.shape_cast %41 : vector<1x128x256xf32> to vector<128x256xf32>
    %cst_29 = arith.constant dense<0.000000e+00> : vector<16x256xf32>
    %43 = tpu.matmul %40, %42, %cst_29 {dimension_numbers = #tpu.dot_dimension_numbers<[1], [0], [0], [1], [0, 0, 1, 1], [], []>} : vector<16x128xf32>, vector<128x256xf32>, vector<16x256xf32> -> vector<16x256xf32>
    %cst_30 = arith.constant dense<0.000000e+00> : vector<16x256xf32>
    %44 = tpu.matmul %0, %43, %cst_30 {dimension_numbers = #tpu.dot_dimension_numbers<[1], [0], [0], [1], [0, 0, 1, 1], [], []>} : vector<16x16xf32>, vector<16x256xf32>, vector<16x256xf32> -> vector<16x256xf32>
    %c3_31 = arith.constant 3 : index
    %c0_32 = arith.constant 0 : index
    %c0_33 = arith.constant 0 : index
    %45 = vector.load %arg4[%c3_31, %c0_32, %c0_33] : memref<7x1x256xf32, #tpu.memory_space<vmem>>, vector<1x1x256xf32>
    %46 = vector.shape_cast %45 : vector<1x1x256xf32> to vector<1x256xf32>
    %47 = vector.broadcast %46 : vector<1x256xf32> to vector<16x256xf32>
    %48 = arith.addf %44, %47 : vector<16x256xf32>
    %49 = vector.extract_strided_slice %48 {offsets = [0, 0], sizes = [16, 128], strides = [1, 1]} : vector<16x256xf32> to vector<16x128xf32>
    %cst_34 = arith.constant 0.000000e+00 : f32
    %50 = vector.broadcast %cst_34 : f32 to vector<16x128xf32>
    %51 = arith.maximumf %49, %50 : vector<16x128xf32>
    %52 = vector.extract_strided_slice %48 {offsets = [0, 128], sizes = [16, 128], strides = [1, 1]} : vector<16x256xf32> to vector<16x128xf32>
    %53 = arith.addf %51, %52 : vector<16x128xf32>
    %c4 = arith.constant 4 : index
    %c0_35 = arith.constant 0 : index
    %c0_36 = arith.constant 0 : index
    %54 = vector.load %arg3[%c4, %c0_35, %c0_36] : memref<7x128x256xf32, #tpu.memory_space<vmem>>, vector<1x128x256xf32>
    %55 = vector.shape_cast %54 : vector<1x128x256xf32> to vector<128x256xf32>
    %cst_37 = arith.constant dense<0.000000e+00> : vector<16x256xf32>
    %56 = tpu.matmul %53, %55, %cst_37 {dimension_numbers = #tpu.dot_dimension_numbers<[1], [0], [0], [1], [0, 0, 1, 1], [], []>} : vector<16x128xf32>, vector<128x256xf32>, vector<16x256xf32> -> vector<16x256xf32>
    %cst_38 = arith.constant dense<0.000000e+00> : vector<16x256xf32>
    %57 = tpu.matmul %0, %56, %cst_38 {dimension_numbers = #tpu.dot_dimension_numbers<[1], [0], [0], [1], [0, 0, 1, 1], [], []>} : vector<16x16xf32>, vector<16x256xf32>, vector<16x256xf32> -> vector<16x256xf32>
    %c4_39 = arith.constant 4 : index
    %c0_40 = arith.constant 0 : index
    %c0_41 = arith.constant 0 : index
    %58 = vector.load %arg4[%c4_39, %c0_40, %c0_41] : memref<7x1x256xf32, #tpu.memory_space<vmem>>, vector<1x1x256xf32>
    %59 = vector.shape_cast %58 : vector<1x1x256xf32> to vector<1x256xf32>
    %60 = vector.broadcast %59 : vector<1x256xf32> to vector<16x256xf32>
    %61 = arith.addf %57, %60 : vector<16x256xf32>
    %62 = vector.extract_strided_slice %61 {offsets = [0, 0], sizes = [16, 128], strides = [1, 1]} : vector<16x256xf32> to vector<16x128xf32>
    %cst_42 = arith.constant 0.000000e+00 : f32
    %63 = vector.broadcast %cst_42 : f32 to vector<16x128xf32>
    %64 = arith.maximumf %62, %63 : vector<16x128xf32>
    %65 = vector.extract_strided_slice %61 {offsets = [0, 128], sizes = [16, 128], strides = [1, 1]} : vector<16x256xf32> to vector<16x128xf32>
    %66 = arith.addf %64, %65 : vector<16x128xf32>
    %c5 = arith.constant 5 : index
    %c0_43 = arith.constant 0 : index
    %c0_44 = arith.constant 0 : index
    %67 = vector.load %arg3[%c5, %c0_43, %c0_44] : memref<7x128x256xf32, #tpu.memory_space<vmem>>, vector<1x128x256xf32>
    %68 = vector.shape_cast %67 : vector<1x128x256xf32> to vector<128x256xf32>
    %cst_45 = arith.constant dense<0.000000e+00> : vector<16x256xf32>
    %69 = tpu.matmul %66, %68, %cst_45 {dimension_numbers = #tpu.dot_dimension_numbers<[1], [0], [0], [1], [0, 0, 1, 1], [], []>} : vector<16x128xf32>, vector<128x256xf32>, vector<16x256xf32> -> vector<16x256xf32>
    %cst_46 = arith.constant dense<0.000000e+00> : vector<16x256xf32>
    %70 = tpu.matmul %0, %69, %cst_46 {dimension_numbers = #tpu.dot_dimension_numbers<[1], [0], [0], [1], [0, 0, 1, 1], [], []>} : vector<16x16xf32>, vector<16x256xf32>, vector<16x256xf32> -> vector<16x256xf32>
    %c5_47 = arith.constant 5 : index
    %c0_48 = arith.constant 0 : index
    %c0_49 = arith.constant 0 : index
    %71 = vector.load %arg4[%c5_47, %c0_48, %c0_49] : memref<7x1x256xf32, #tpu.memory_space<vmem>>, vector<1x1x256xf32>
    %72 = vector.shape_cast %71 : vector<1x1x256xf32> to vector<1x256xf32>
    %73 = vector.broadcast %72 : vector<1x256xf32> to vector<16x256xf32>
    %74 = arith.addf %70, %73 : vector<16x256xf32>
    %75 = vector.extract_strided_slice %74 {offsets = [0, 0], sizes = [16, 128], strides = [1, 1]} : vector<16x256xf32> to vector<16x128xf32>
    %cst_50 = arith.constant 0.000000e+00 : f32
    %76 = vector.broadcast %cst_50 : f32 to vector<16x128xf32>
    %77 = arith.maximumf %75, %76 : vector<16x128xf32>
    %78 = vector.extract_strided_slice %74 {offsets = [0, 128], sizes = [16, 128], strides = [1, 1]} : vector<16x256xf32> to vector<16x128xf32>
    %79 = arith.addf %77, %78 : vector<16x128xf32>
    %c6 = arith.constant 6 : index
    %c0_51 = arith.constant 0 : index
    %c0_52 = arith.constant 0 : index
    %80 = vector.load %arg3[%c6, %c0_51, %c0_52] : memref<7x128x256xf32, #tpu.memory_space<vmem>>, vector<1x128x256xf32>
    %81 = vector.shape_cast %80 : vector<1x128x256xf32> to vector<128x256xf32>
    %cst_53 = arith.constant dense<0.000000e+00> : vector<16x256xf32>
    %82 = tpu.matmul %79, %81, %cst_53 {dimension_numbers = #tpu.dot_dimension_numbers<[1], [0], [0], [1], [0, 0, 1, 1], [], []>} : vector<16x128xf32>, vector<128x256xf32>, vector<16x256xf32> -> vector<16x256xf32>
    %cst_54 = arith.constant dense<0.000000e+00> : vector<16x256xf32>
    %83 = tpu.matmul %0, %82, %cst_54 {dimension_numbers = #tpu.dot_dimension_numbers<[1], [0], [0], [1], [0, 0, 1, 1], [], []>} : vector<16x16xf32>, vector<16x256xf32>, vector<16x256xf32> -> vector<16x256xf32>
    %c6_55 = arith.constant 6 : index
    %c0_56 = arith.constant 0 : index
    %c0_57 = arith.constant 0 : index
    %84 = vector.load %arg4[%c6_55, %c0_56, %c0_57] : memref<7x1x256xf32, #tpu.memory_space<vmem>>, vector<1x1x256xf32>
    %85 = vector.shape_cast %84 : vector<1x1x256xf32> to vector<1x256xf32>
    %86 = vector.broadcast %85 : vector<1x256xf32> to vector<16x256xf32>
    %87 = arith.addf %83, %86 : vector<16x256xf32>
    %88 = vector.extract_strided_slice %87 {offsets = [0, 0], sizes = [16, 128], strides = [1, 1]} : vector<16x256xf32> to vector<16x128xf32>
    %cst_58 = arith.constant 0.000000e+00 : f32
    %89 = vector.broadcast %cst_58 : f32 to vector<16x128xf32>
    %90 = arith.maximumf %88, %89 : vector<16x128xf32>
    %91 = vector.extract_strided_slice %87 {offsets = [0, 128], sizes = [16, 128], strides = [1, 1]} : vector<16x256xf32> to vector<16x128xf32>
    %92 = arith.addf %90, %91 : vector<16x128xf32>
    %c0_59 = arith.constant 0 : index
    %c0_60 = arith.constant 0 : index
    %93 = vector.load %arg5[%c0_59, %c0_60] : memref<128x128xf32, #tpu.memory_space<vmem>>, vector<128x128xf32>
    %cst_61 = arith.constant dense<0.000000e+00> : vector<16x128xf32>
    %94 = tpu.matmul %92, %93, %cst_61 {dimension_numbers = #tpu.dot_dimension_numbers<[1], [0], [0], [1], [0, 0, 1, 1], [], []>} : vector<16x128xf32>, vector<128x128xf32>, vector<16x128xf32> -> vector<16x128xf32>
    %c0_62 = arith.constant 0 : index
    %c0_63 = arith.constant 0 : index
    %95 = vector.load %arg6[%c0_62, %c0_63] : memref<128x128xf32, #tpu.memory_space<vmem>>, vector<128x128xf32>
    %cst_64 = arith.constant dense<0.000000e+00> : vector<16x128xf32>
    %96 = tpu.matmul %1, %95, %cst_64 {dimension_numbers = #tpu.dot_dimension_numbers<[1], [0], [0], [1], [0, 0, 1, 1], [], []>} : vector<16x128xf32>, vector<128x128xf32>, vector<16x128xf32> -> vector<16x128xf32>
    %97 = arith.addf %94, %96 : vector<16x128xf32>
    %cst_65 = arith.constant dense<0.000000e+00> : vector<16x128xf32>
    %98 = tpu.matmul %0, %97, %cst_65 {dimension_numbers = #tpu.dot_dimension_numbers<[1], [0], [0], [1], [0, 0, 1, 1], [], []>} : vector<16x16xf32>, vector<16x128xf32>, vector<16x128xf32> -> vector<16x128xf32>
    %c0_66 = arith.constant 0 : index
    %c0_67 = arith.constant 0 : index
    %99 = vector.load %arg7[%c0_66, %c0_67] : memref<1x128xf32, #tpu.memory_space<vmem>>, vector<1x128xf32>
    %100 = vector.broadcast %99 : vector<1x128xf32> to vector<16x128xf32>
    %101 = arith.addf %98, %100 : vector<16x128xf32>
    %c0_68 = arith.constant 0 : index
    %c0_69 = arith.constant 0 : index
    %102 = vector.load %arg8[%c0_68, %c0_69] : memref<16x128xf32, #tpu.memory_space<vmem>>, vector<16x128xf32>
    tpu.vector_store %arg8[%c0_68, %c0_69], %101 {strides = array<i32>} : memref<16x128xf32, #tpu.memory_space<vmem>>, vector<16x128xf32>,
    return
  }
  func.func @transform_0(%arg0: i32) -> (i32, i32) {
    %c0_i32 = arith.constant 0 : i32
    %c0_i32_0 = arith.constant 0 : i32
    %c0_i32_1 = arith.constant 0 : i32
    return %c0_i32, %c0_i32_0 : i32, i32
  }
  func.func @transform_1(%arg0: i32) -> (i32, i32) {
    %c0_i32 = arith.constant 0 : i32
    %c0_i32_0 = arith.constant 0 : i32
    %c0_i32_1 = arith.constant 0 : i32
    return %c0_i32, %c0_i32_0 : i32, i32
  }
  func.func @transform_2(%arg0: i32) -> (i32, i32, i32) {
    %c0_i32 = arith.constant 0 : i32
    %c0_i32_0 = arith.constant 0 : i32
    %c0_i32_1 = arith.constant 0 : i32
    %c0_i32_2 = arith.constant 0 : i32
    return %c0_i32, %c0_i32_0, %c0_i32_1 : i32, i32, i32
  }
  func.func @transform_3(%arg0: i32) -> (i32, i32, i32) {
    %c0_i32 = arith.constant 0 : i32
    %c0_i32_0 = arith.constant 0 : i32
    %c0_i32_1 = arith.constant 0 : i32
    %c0_i32_2 = arith.constant 0 : i32
    return %c0_i32, %c0_i32_0, %c0_i32_1 : i32, i32, i32
  }
  func.func @transform_4(%arg0: i32) -> (i32, i32) {
    %c0_i32 = arith.constant 0 : i32
    %c0_i32_0 = arith.constant 0 : i32
    %c0_i32_1 = arith.constant 0 : i32
    return %c0_i32, %c0_i32_0 : i32, i32
  }
  func.func @transform_5(%arg0: i32) -> (i32, i32) {
    %c0_i32 = arith.constant 0 : i32
    %c0_i32_0 = arith.constant 0 : i32
    %c0_i32_1 = arith.constant 0 : i32
    return %c0_i32, %c0_i32_0 : i32, i32
  }
  func.func @transform_6(%arg0: i32) -> (i32, i32) {
    %c0_i32 = arith.constant 0 : i32
    %c0_i32_0 = arith.constant 0 : i32
    %c0_i32_1 = arith.constant 0 : i32
    return %c0_i32, %c0_i32_0 : i32, i32
  }
  func.func @transform_7(%arg0: i32) -> (i32, i32) {
    %c0_i32 = arith.constant 0 : i32
    %c0_i32_0 = arith.constant 0 : i32
    %c0_i32_1 = arith.constant 0 : i32
    return %c0_i32, %c0_i32_0 : i32, i32
  }
}

</mosaic_0001>

<bundles_post_ra>
// kernel: tpu_custom_call.1
= control target key start
LH: loop header
LB: loop body
LE: loop exit
PB: predicated region body
PF: predicated region fallthrough
CT: control target
= control target key end

     0   :  { %12 = vsyncpa [#allocation3], 0  ;;  %s2729_s0 = inlined_call_operand.hbm [shape: f32[16,16], index: 0, kind: input, shape index: {}]   ;;  %s2730_s1 = inlined_call_operand.hbm [shape: f32[16,128], index: 1, kind: input, shape index: {}]   ;;  %s2731_s2 = inlined_call_operand.hbm [shape: f32[7,128,256], index: 2, kind: input, shape index: {}]   ;;  %s2732_s3 = inlined_call_operand.hbm [shape: f32[7,1,256], index: 3, kind: input, shape index: {}]   ;;  %s2733_s4 = inlined_call_operand.hbm [shape: f32[128,128], index: 4, kind: input, shape index: {}]   ;;  %s2734_s5 = inlined_call_operand.hbm [shape: f32[128,128], index: 5, kind: input, shape index: {}]   ;;  %s2735_s6 = inlined_call_operand.vmem [shape: f32[1,128], index: 6, kind: input, shape index: {}]   ;;  %s2736_s7 = inlined_call_operand.hbm [shape: f32[16,128], index: 7, kind: output, shape index: {}]  }
   0x1   :  { %13 = vsyncpa [#allocation6], 0 }
   0x2   :  { %14 = vsyncpa [#allocation9], 0 }
   0x3   :  { %15 = vsyncpa [#allocation12], 0 }
   0x4   :  { %16 = vsyncpa [#allocation4], 0  ;;  %s2470_s24 = smov [#allocation5]   ;;  %s2471_s26 = smov [#allocation8]  }
   0x5   :  { %s34_s25 = sshll.u32 %s2470_s24, 4  ;;  %s58_s27 = sshll.u32 %s2471_s26, 4  ;;  %s35_s25 = int_to_ptr.vmem [resolvable:$true] %s34_s25  ;;  %s2524_s27 = int_to_ptr.vmem [resolvable:$true] %s58_s27 }
   0x6   :  { %s2306_s30 = scalar_lea.hbm %s2730_s1, 256 }
   0x7   :  { %p2307_p0 = scmp.ne.s32.totalorder %s2730_s1, %s2306_s30  ;;  %p2310_p1 = scmp.lt.u32.totalorder %s2306_s30, %s2730_s1 }
   0x9   :  { %p2312_p2 = pnand %p2310_p1, %p2307_p0 }
   0xb   :  { %2315 = shalt.err (!%p2312_p2)
}
   0xc   :  { %s2316_s12 = scalar_lea.vmem %s35_s25, 256  ;;  %p2321_p4 = scmp.lt.s32.totalorder %s35_s25, %s35_s25 }
   0xd   :  { %p2317_p3 = scmp.ne.s32.totalorder %s35_s25, %s2316_s12  ;;  %p2322_p5 = scmp.lt.s32.totalorder %s2316_s12, %s2316_s12 }
   0xf   :  { %p2323_p6 = por %p2322_p5, %p2321_p4 }
  0x11   :  { %p2324_p7 = pnand %p2323_p6, %p2317_p3 }
  0x13   :  { %2327 = shalt.err (!%p2324_p7)
}
  0x14   :  { %s2472_s13 = smov 128   ;;  %s2473_s14 = smov 8  }
  0x15   :  { %40 = dma.hbm_to_vmem [thread:$0]  %s2730_s1, 256, %s35_s25, [#allocation6], %s2472_s13, %s2472_s13, %s2473_s14  }
  0x16   :  { %s2328_s19 = scalar_lea.hbm %s2732_s3, 224 }
  0x17   :  { %p2329_p8 = scmp.ne.s32.totalorder %s2732_s3, %s2328_s19  ;;  %p2332_p9 = scmp.lt.u32.totalorder %s2328_s19, %s2732_s3 }
  0x19   :  { %p2334_p10 = pnand %p2332_p9, %p2329_p8 }
  0x1b   :  { %2337 = shalt.err (!%p2334_p10)
}
  0x1c   :  { %s2338_s24 = scalar_lea.vmem %s2524_s27, 224  ;;  %p2343_p12 = scmp.lt.s32.totalorder %s2524_s27, %s2524_s27 }
  0x1d   :  { %p2339_p11 = scmp.ne.s32.totalorder %s2524_s27, %s2338_s24  ;;  %p2344_p13 = scmp.lt.s32.totalorder %s2338_s24, %s2338_s24 }
  0x1f   :  { %p2345_p0 = por %p2344_p13, %p2343_p12 }
  0x21   :  { %p2346_p1 = pnand %p2345_p0, %p2339_p11 }
  0x23   :  { %2349 = shalt.err (!%p2346_p1)
}
  0x24   :  { %s2474_s1 = smov 32   ;;  %s2475_s25 = smov 2  }
  0x25   :  { %64 = dma.hbm_to_vmem [thread:$0]  %s2732_s3, 224, %s2524_s27, [#allocation9], %s2474_s1, %s2474_s1, %s2475_s25  }
  0x26   :  { %s2476_s29 = smov [#allocation2]   ;;  %s2477_s8 = smov [#allocation7]  }
  0x27   :  { %s22_s30 = sshll.u32 %s2476_s29, 4  ;;  %s46_s9 = sshll.u32 %s2477_s8, 4  ;;  %s23_s30 = int_to_ptr.vmem [resolvable:$true] %s22_s30  ;;  %s2558_s9 = int_to_ptr.vmem [resolvable:$true] %s46_s9 }
  0x28   :  { %s2350_s12 = scalar_lea.hbm %s2729_s0, 256 }
  0x29   :  { %p2351_p2 = scmp.ne.s32.totalorder %s2729_s0, %s2350_s12  ;;  %p2354_p3 = scmp.lt.u32.totalorder %s2350_s12, %s2729_s0 }
  0x2b   :  { %p2356_p4 = pnand %p2354_p3, %p2351_p2 }
  0x2d   :  { %2359 = shalt.err (!%p2356_p4)
}
  0x2e   :  { %s2360_s3 = scalar_lea.vmem %s23_s30, 256  ;;  %p2365_p6 = scmp.lt.s32.totalorder %s23_s30, %s23_s30 }
  0x2f   :  { %p2361_p5 = scmp.ne.s32.totalorder %s23_s30, %s2360_s3  ;;  %p2366_p7 = scmp.lt.s32.totalorder %s2360_s3, %s2360_s3 }
  0x31   :  { %p2367_p8 = por %p2366_p7, %p2365_p6 }
  0x33   :  { %p2368_p9 = pnand %p2367_p8, %p2361_p5 }
  0x35   :  { %2371 = shalt.err (!%p2368_p9)
}
  0x36   :  { %28 = dma.hbm_to_vmem [thread:$0]  %s2729_s0, 256, %s23_s30, [#allocation3], %s2472_s13, %s2472_s13, %s2473_s14  }
  0x37   :  { %s2372_s22 = scalar_lea.hbm %s2731_s2, 28672 }
  0x38   :  { %p2373_p10 = scmp.ne.s32.totalorder %s2731_s2, %s2372_s22  ;;  %p2376_p11 = scmp.lt.u32.totalorder %s2372_s22, %s2731_s2 }
  0x3a   :  { %p2378_p12 = pnand %p2376_p11, %p2373_p10 }
  0x3c   :  { %2381 = shalt.err (!%p2378_p12)
}
  0x3d   :  { %s2382_s26 = scalar_lea.vmem %s2558_s9, 28672  ;;  %p2387_p0 = scmp.lt.s32.totalorder %s2558_s9, %s2558_s9 }
  0x3e   :  { %p2383_p13 = scmp.ne.s32.totalorder %s2558_s9, %s2382_s26  ;;  %p2388_p1 = scmp.lt.s32.totalorder %s2382_s26, %s2382_s26 }
  0x40   :  { %p2389_p2 = por %p2388_p1, %p2387_p0 }
  0x42   :  { %p2390_p3 = pnand %p2389_p2, %p2383_p13 }
  0x44   :  { %2393 = shalt.err (!%p2390_p3)
}
  0x45   :  { %s2478_s0 = smov 256   ;;  %s2479_s28 = smov 16  }
  0x46   :  { %52 = dma.hbm_to_vmem [thread:$0]  %s2731_s2, 28672, %s2558_s9, [#allocation6], %s2478_s0, %s2478_s0, %s2479_s28  }
  0x47   :  { %s2480_s8 = smov [#allocation10]   ;;  %s2481_s11 = smov [#allocation11]  }
  0x48   :  { %s70_s10 = sshll.u32 %s2480_s8, 4  ;;  %s82_s12 = sshll.u32 %s2481_s11, 4  ;;  %s71_s10 = int_to_ptr.vmem [resolvable:$true] %s70_s10  ;;  %s2592_s12 = int_to_ptr.vmem [resolvable:$true] %s82_s12 }
  0x49   :  { %s2394_s17 = scalar_lea.hbm %s2733_s4, 2048 }
  0x4a   :  { %p2395_p4 = scmp.ne.s32.totalorder %s2733_s4, %s2394_s17  ;;  %p2398_p5 = scmp.lt.u32.totalorder %s2394_s17, %s2733_s4 }
  0x4c   :  { %p2400_p6 = pnand %p2398_p5, %p2395_p4 }
  0x4e   :  { %2403 = shalt.err (!%p2400_p6)
}
  0x4f   :  { %s2404_s2 = scalar_lea.vmem %s71_s10, 2048  ;;  %p2409_p8 = scmp.lt.s32.totalorder %s71_s10, %s71_s10 }
  0x50   :  { %p2405_p7 = scmp.ne.s32.totalorder %s71_s10, %s2404_s2  ;;  %p2410_p9 = scmp.lt.s32.totalorder %s2404_s2, %s2404_s2 }
  0x52   :  { %p2411_p10 = por %p2410_p9, %p2409_p8 }
  0x54   :  { %p2412_p11 = pnand %p2411_p10, %p2405_p7 }
  0x56   :  { %2415 = shalt.err (!%p2412_p11)
}
  0x57   :  { %76 = dma.hbm_to_vmem [thread:$0]  %s2733_s4, 2048, %s71_s10, [#allocation9], %s2472_s13, %s2472_s13, %s2473_s14  }
  0x58   :  { %s2416_s23 = scalar_lea.hbm %s2734_s5, 2048 }
  0x59   :  { %p2417_p12 = scmp.ne.s32.totalorder %s2734_s5, %s2416_s23  ;;  %p2420_p13 = scmp.lt.u32.totalorder %s2416_s23, %s2734_s5 }
  0x5b   :  { %p2422_p0 = pnand %p2420_p13, %p2417_p12 }
  0x5d   :  { %2425 = shalt.err (!%p2422_p0)
}
  0x5e   :  { %s2426_s0 = scalar_lea.vmem %s2592_s12, 2048  ;;  %p2431_p2 = scmp.lt.s32.totalorder %s2592_s12, %s2592_s12 }
  0x5f   :  { %p2427_p1 = scmp.ne.s32.totalorder %s2592_s12, %s2426_s0  ;;  %p2432_p3 = scmp.lt.s32.totalorder %s2426_s0, %s2426_s0 }
  0x61   :  { %p2433_p4 = por %p2432_p3, %p2431_p2 }
  0x63   :  { %p2434_p5 = pnand %p2433_p4, %p2427_p1 }
  0x65   :  { %2437 = shalt.err (!%p2434_p5)
}
  0x66   :  { %88 = dma.hbm_to_vmem [thread:$0]  %s2734_s5, 2048, %s2592_s12, [#allocation12], %s2472_s13, %s2472_s13, %s2473_s14  }
  0x67   :  { %2460 = dma.done.wait [#allocation3], 256  }
  0x68   :  { %2461 = vsyncadd [#allocation3], 4294967040 }
  0x69   :  { %2462 = dma.done.wait [#allocation6], 28928  }
  0x6a   :  { %2463 = vsyncadd [#allocation6], 4294938368 }
  0x6b   :  { %2464 = dma.done.wait [#allocation9], 2272  }
  0x6c   :  { %2465 = vsyncadd [#allocation9], 4294965024 }
  0x6d   :  { %2466 = dma.done.wait [#allocation12], 2048  }
  0x6e   :  { %2467 = vsyncadd [#allocation12], 4294965248  ;;  %v2482_v0 = vmov 0.0   ;;  %v114_v1 = vld [vmem:[#allocation7 + $0x8] sm:$0xff]  ;;  %v116_v2 = vld [vmem:[#allocation7 + $0x18] sm:$0xff]  ;;  %vm234_vm0 = vcmask 130048  }
  0x6f   :  { %209 = vmatprep.mubr.f32.mxu0 %v2482_v0  ;;  %305 = vmatprep.mubr.f32.mxu1 %v2482_v0  ;;  %v113_v3 = vld [vmem:[#allocation7] sm:$0xff]  ;;  %v1966_v4 = vpack.c.bf16 %v116_v2, %v114_v1  ;;  %v115_v5 = vld [vmem:[#allocation7 + $0x10] sm:$0xff]  ;;  %v118_v6 = vld [vmem:[#allocation7 + $0x28] sm:$0xff]  ;;  %s2483_s30 = smov [#allocation13]  }
  0x70   :  { %v120_v7 = vld [vmem:[#allocation7 + $0x38] sm:$0xff]  ;;  %v1968_v8 = vpack.c.bf16 %v115_v5, %v113_v3  ;;  %v117_v10 = vld [vmem:[#allocation7 + $0x20] sm:$0xff]  ;;  %v119_v11 = vld [vmem:[#allocation7 + $0x30] sm:$0xff]  ;;  %s1817_s8 = sshll.u32 %s2483_s30, 4  ;;  %s1818_s8 = int_to_ptr.vmem [resolvable:$true] %s1817_s8 }
  0x71   :  { %v1970_v9 = vpack.c.bf16 %v120_v7, %v118_v6  ;;  %v122_v12 = vld [vmem:[#allocation7 + $0x48] sm:$0xff]  ;;  %1967 = vmatprep.subr.bf16.mxu0 %v1966_v4  ;;  %v124_v13 = vld [vmem:[#allocation7 + $0x58] sm:$0xff]  ;;  %v1972_v14 = vpack.c.bf16 %v119_v11, %v117_v10  ;;  %v121_v16 = vld [vmem:[#allocation7 + $0x40] sm:$0xff]  ;;  %s2438_s10 = scalar_lea.vmem %s1818_s8, 256  ;;  %p2443_p7 = scmp.lt.s32.totalorder %s1818_s8, %s1818_s8 }
  0x72   :  { %1969 = vmatpush1.bf16.msra.mxu0 %v1968_v8  ;;  %v1974_v15 = vpack.c.bf16 %v124_v13, %v122_v12  ;;  %v123_v17 = vld [vmem:[#allocation7 + $0x50] sm:$0xff]  ;;  %v126_v18 = vld [vmem:[#allocation7 + $0x68] sm:$0xff]  ;;  %v128_v19 = vld [vmem:[#allocation7 + $0x78] sm:$0xff]  ;;  %p2439_p6 = scmp.ne.s32.totalorder %s1818_s8, %s2438_s10  ;;  %p2444_p8 = scmp.lt.s32.totalorder %s2438_s10, %s2438_s10 }
  0x73   :  { %1971 = vmatprep.subr.bf16.mxu0 %v1970_v9  ;;  %v1976_v20 = vpack.c.bf16 %v123_v17, %v121_v16  ;;  %v1978_v21 = vpack.c.bf16 %v128_v19, %v126_v18  ;;  %v125_v22 = vld [vmem:[#allocation7 + $0x60] sm:$0xff]  ;;  %v127_v23 = vld [vmem:[#allocation7 + $0x70] sm:$0xff]  ;;  %v130_v24 = vld [vmem:[#allocation7 + $0x88] sm:$0xff] }
  0x74   :  { %v132_v25 = vld [vmem:[#allocation7 + $0x98] sm:$0xff]  ;;  %v1980_v26 = vpack.c.bf16 %v127_v23, %v125_v22  ;;  %v129_v28 = vld [vmem:[#allocation7 + $0x80] sm:$0xff]  ;;  %v131_v29 = vld [vmem:[#allocation7 + $0x90] sm:$0xff]  ;;  %p2445_p9 = por %p2444_p8, %p2443_p7 }
  0x75   :  { %v1982_v27 = vpack.c.bf16 %v132_v25, %v130_v24  ;;  %v134_v30 = vld [vmem:[#allocation7 + $0xa8] sm:$0xff]  ;;  %v136_v31 = vld [vmem:[#allocation7 + $0xb8] sm:$0xff]  ;;  %v1984_v32 = vpack.c.bf16 %v131_v29, %v129_v28  ;;  %v133_v34 = vld [vmem:[#allocation7 + $0xa0] sm:$0xff] }
  0x76   :  { %1973 = vmatpush1.bf16.msra.mxu0 %v1972_v14  ;;  %v1986_v33 = vpack.c.bf16 %v136_v31, %v134_v30  ;;  %v135_v35 = vld [vmem:[#allocation7 + $0xb0] sm:$0xff]  ;;  %v138_v36 = vld [vmem:[#allocation7 + $0xc8] sm:$0xff]  ;;  %v140_v37 = vld [vmem:[#allocation7 + $0xd8] sm:$0xff]  ;;  %p2446_p10 = pnand %p2445_p9, %p2439_p6 }
  0x77   :  { %1975 = vmatprep.subr.bf16.mxu0 %v1974_v15  ;;  %v1988_v38 = vpack.c.bf16 %v135_v35, %v133_v34  ;;  %v1990_v39 = vpack.c.bf16 %v140_v37, %v138_v36  ;;  %v137_v40 = vld [vmem:[#allocation7 + $0xc0] sm:$0xff]  ;;  %v139_v41 = vld [vmem:[#allocation7 + $0xd0] sm:$0xff]  ;;  %v142_v42 = vld [vmem:[#allocation7 + $0xe8] sm:$0xff] }
  0x78   :  { %v144_v43 = vld [vmem:[#allocation7 + $0xf8] sm:$0xff]  ;;  %v1992_v44 = vpack.c.bf16 %v139_v41, %v137_v40  ;;  %v141_v46 = vld [vmem:[#allocation7 + $0xe0] sm:$0xff]  ;;  %v143_v47 = vld [vmem:[#allocation7 + $0xf0] sm:$0xff] }
  0x79   :  { %v1994_v45 = vpack.c.bf16 %v144_v43, %v142_v42  ;;  %v1996_v48 = vpack.c.bf16 %v143_v47, %v141_v46  ;;  %v111_v49 = vld [vmem:[#allocation5] sm:$0xff]  ;;  %v112_v50 = vld [vmem:[#allocation5 + $0x8] sm:$0xff]  ;;  %v324_v53 = vld [vmem:[#allocation7 + $0x108] sm:$0xff] }
  0x7a   :  { %1977 = vmatpush1.bf16.msra.mxu0 %v1976_v20  ;;  %v326_v54 = vld [vmem:[#allocation7 + $0x118] sm:$0xff]  ;;  %v323_v60 = vld [vmem:[#allocation7 + $0x100] sm:$0xff]  ;;  %v325_v61 = vld [vmem:[#allocation7 + $0x110] sm:$0xff] }
  0x7b   :  { %1979 = vmatprep.subr.bf16.mxu0 %v1978_v21  ;;  %v2002_v59 = vpack.c.bf16 %v326_v54, %v324_v53  ;;  %v328_v62 = vld [vmem:[#allocation7 + $0x128] sm:$0xff]  ;;  %v330_v63 = vld [vmem:[#allocation7 + $0x138] sm:$0xff]  ;;  %v2633_v1 = vld [vmem:[#allocation2] sm:$0xff]  ;;  %v2004_v2 = vpack.c.bf16 %v325_v61, %v323_v60 }
  0x7c   :  { %v2006_v3 = vpack.c.bf16 %v330_v63, %v328_v62  ;;  %v327_v4 = vld [vmem:[#allocation7 + $0x120] sm:$0xff]  ;;  %v329_v5 = vld [vmem:[#allocation7 + $0x130] sm:$0xff]  ;;  %v332_v6 = vld [vmem:[#allocation7 + $0x148] sm:$0xff] }
  0x7d   :  { %v334_v7 = vld [vmem:[#allocation7 + $0x158] sm:$0xff]  ;;  %v2638_v8 = vld [vmem:[#allocation2 + $0x8] sm:$0xff]  ;;  %v2008_v9 = vpack.c.bf16 %v329_v5, %v327_v4  ;;  %v331_v11 = vld [vmem:[#allocation7 + $0x140] sm:$0xff] }
  0x7e   :  { %1981 = vmatpush1.bf16.msra.mxu0 %v1980_v26  ;;  %v2010_v10 = vpack.c.bf16 %v334_v7, %v332_v6  ;;  %v333_v12 = vld [vmem:[#allocation7 + $0x150] sm:$0xff]  ;;  %v336_v13 = vld [vmem:[#allocation7 + $0x168] sm:$0xff]  ;;  %v338_v14 = vld [vmem:[#allocation7 + $0x178] sm:$0xff] }
  0x7f   :  { %1983 = vmatprep.subr.bf16.mxu0 %v1982_v27  ;;  %v2012_v15 = vpack.c.bf16 %v333_v12, %v331_v11  ;;  %v2014_v16 = vpack.c.bf16 %v338_v14, %v336_v13  ;;  %v335_v17 = vld [vmem:[#allocation7 + $0x160] sm:$0xff]  ;;  %v337_v18 = vld [vmem:[#allocation7 + $0x170] sm:$0xff]  ;;  %v340_v19 = vld [vmem:[#allocation7 + $0x188] sm:$0xff] }
  0x80   :  { %v342_v20 = vld [vmem:[#allocation7 + $0x198] sm:$0xff]  ;;  %v2016_v21 = vpack.c.bf16 %v337_v18, %v335_v17  ;;  %v339_v23 = vld [vmem:[#allocation7 + $0x180] sm:$0xff]  ;;  %v341_v24 = vld [vmem:[#allocation7 + $0x190] sm:$0xff] }
  0x81   :  { %v2018_v22 = vpack.c.bf16 %v342_v20, %v340_v19  ;;  %v344_v25 = vld [vmem:[#allocation7 + $0x1a8] sm:$0xff]  ;;  %v346_v26 = vld [vmem:[#allocation7 + $0x1b8] sm:$0xff]  ;;  %v2020_v27 = vpack.c.bf16 %v341_v24, %v339_v23  ;;  %v343_v29 = vld [vmem:[#allocation7 + $0x1a0] sm:$0xff] }
  0x82   :  { %1985 = vmatpush1.bf16.msra.mxu0 %v1984_v32  ;;  %v2022_v28 = vpack.c.bf16 %v346_v26, %v344_v25  ;;  %v345_v30 = vld [vmem:[#allocation7 + $0x1b0] sm:$0xff]  ;;  %v348_v31 = vld [vmem:[#allocation7 + $0x1c8] sm:$0xff]  ;;  %v350_v32 = vld [vmem:[#allocation7 + $0x1d8] sm:$0xff] }
  0x83   :  { %1987 = vmatprep.subr.bf16.mxu0 %v1986_v33  ;;  %v2024_v33 = vpack.c.bf16 %v345_v30, %v343_v29  ;;  %v2026_v34 = vpack.c.bf16 %v350_v32, %v348_v31  ;;  %v347_v35 = vld [vmem:[#allocation7 + $0x1c0] sm:$0xff]  ;;  %v349_v36 = vld [vmem:[#allocation7 + $0x1d0] sm:$0xff]  ;;  %v530_v4 = vld [vmem:[#allocation7 + $0x218] sm:$0xff] }
  0x84   :  { %v2028_v37 = vpack.c.bf16 %v349_v36, %v347_v35  ;;  %v351_v41 = vld [vmem:[#allocation7 + $0x1e0] sm:$0xff]  ;;  %v353_v42 = vld [vmem:[#allocation7 + $0x1f0] sm:$0xff]  ;;  %v532_v13 = vld [vmem:[#allocation7 + $0x228] sm:$0xff] }
  0x85   :  { %v2032_v43 = vpack.c.bf16 %v353_v42, %v351_v41  ;;  %v222_v47 = vld [vmem:[#allocation8] sm:$0x3]  ;;  %v529_v12 = vld [vmem:[#allocation7 + $0x210] sm:$0xff]  ;;  %v534_v14 = vld [vmem:[#allocation7 + $0x238] sm:$0xff] }
  0x86   :  { %1989 = vmatpush1.bf16.msra.mxu0 %v1988_v38  ;;  %v352_v38 = vld [vmem:[#allocation7 + $0x1e8] sm:$0xff]  ;;  %v527_v11 = vld [vmem:[#allocation7 + $0x200] sm:$0xff]  ;;  %v533_v18 = vld [vmem:[#allocation7 + $0x230] sm:$0xff] }
  0x87   :  { %1991 = vmatprep.subr.bf16.mxu0 %v1990_v39  ;;  %v354_v39 = vld [vmem:[#allocation7 + $0x1f8] sm:$0xff]  ;;  %v531_v17 = vld [vmem:[#allocation7 + $0x220] sm:$0xff]  ;;  %v536_v19 = vld [vmem:[#allocation7 + $0x248] sm:$0xff] }
  0x88   :  { %v2030_v40 = vpack.c.bf16 %v354_v39, %v352_v38  ;;  %v538_v20 = vld [vmem:[#allocation7 + $0x258] sm:$0xff]  ;;  %v535_v23 = vld [vmem:[#allocation7 + $0x240] sm:$0xff]  ;;  %v537_v24 = vld [vmem:[#allocation7 + $0x250] sm:$0xff] }
  0x89   :  { %v540_v25 = vld [vmem:[#allocation7 + $0x268] sm:$0xff]  ;;  %v542_v26 = vld [vmem:[#allocation7 + $0x278] sm:$0xff]  ;;  %v539_v29 = vld [vmem:[#allocation7 + $0x260] sm:$0xff] }
  0x8a   :  { %1993 = vmatpush1.bf16.msra.mxu0 %v1992_v44  ;;  %v224_v44 = vlaneseq  ;;  %v541_v30 = vld [vmem:[#allocation7 + $0x270] sm:$0xff]  ;;  %v544_v31 = vld [vmem:[#allocation7 + $0x288] sm:$0xff]  ;;  %v546_v32 = vld [vmem:[#allocation7 + $0x298] sm:$0xff] }
  0x8b   :  { %1995 = vmatprep.subr.bf16.mxu0 %v1994_v45  ;;  %v543_v35 = vld [vmem:[#allocation7 + $0x280] sm:$0xff]  ;;  %v545_v36 = vld [vmem:[#allocation7 + $0x290] sm:$0xff]  ;;  %v550_v38 = vld [vmem:[#allocation7 + $0x2b8] sm:$0xff] }
  0x8c   :  { %v225_v45 = vshrl.u32 %v224_v44, 7  ;;  %v2056_v39 = vpack.c.bf16 %v545_v36, %v543_v35  ;;  %v547_v41 = vld [vmem:[#allocation7 + $0x2a0] sm:$0xff]  ;;  %v549_v42 = vld [vmem:[#allocation7 + $0x2b0] sm:$0xff]  ;;  %v554_v44 = vld [vmem:[#allocation7 + $0x2d8] sm:$0xff] }
  0x8d   :  { %v748_v35 = vld [vmem:[#allocation7 + $0x388] sm:$0xff]  ;;  %v750_v36 = vld [vmem:[#allocation7 + $0x398] sm:$0xff] }
  0x8e   :  { %1997 = vmatpush1.bf16.msra.mxu0 %v1996_v48  ;;  %v2643_v46 = vsub.s32 0, %v225_v45  ;;  %v2645_v48 = vsub.s32 1, %v225_v45  ;;  %v2060_v45 = vpack.c.bf16 %v549_v42, %v547_v41  ;;  %v752_v41 = vld [vmem:[#allocation7 + $0x3a8] sm:$0xff]  ;;  %v754_v42 = vld [vmem:[#allocation7 + $0x3b8] sm:$0xff] }
  0x91   :  { %210 = vmatmul.mubr.f32.vlgmr.msra.gmra.mrb[0].mxu0 %v111_v49  ;;  %v227_v49 = vrot.slane %v222_v47, %v2643_v46 }
  0x92   :  { %215 = vmatprep.mubr.f32.mxu0 %v2482_v0 }
  0x95   :  { %216 = vmatmul.mubr.f32.gmra.mrb[2].mxu0 %v112_v50  ;;  %v231_v50 = vrot.slane %v222_v47, %v2645_v48 }
  0x96   :  { %827 = vmatprep.mubr.f32.mxu0 %v2482_v0 }
 0x164   :  { %v211_v51 = vpop.f32.mrb[0].mxu0 }
 0x165   :  { %v213_v52 = vpop.f32.mrb[1].mxu0 }
 0x168   :  { %v217_v55 = vpop.f32.mrb[2].mxu0 }
 0x169   :  { %v2000_v56 = vpack.c.bf16 %v217_v55, %v211_v51  ;;  %v219_v57 = vpop.f32.mrb[3].mxu0 }
 0x16a   :  { %v1998_v58 = vpack.c.bf16 %v219_v57, %v213_v52 }
 0x16c   :  { %1999 = vmatprep.subr.bf16.mxu1 %v1998_v58 }
 0x16d   :  { %2001 = vmatpush1.bf16.msra.mxu1 %v2000_v56 }
 0x16e   :  { %2003 = vmatprep.subr.bf16.mxu1 %v2002_v59 }
 0x170   :  { %1832 = vmatmul.mubr.msk.f32.vlgmr.msra.gmra.mrb[0].mxu1 %vm234_vm0, %v2633_v1 }
 0x171   :  { %311 = vmatprep.mubr.f32.mxu1 %v2482_v0  ;;  %2005 = vmatpush1.bf16.msra.mxu1 %v2004_v2 }
 0x172   :  { %2007 = vmatprep.subr.bf16.mxu1 %v2006_v3  ;;  %v528_v3 = vld [vmem:[#allocation7 + $0x208] sm:$0xff] }
 0x174   :  { %1833 = vmatmul.mubr.msk.f32.gmra.mrb[2].mxu1 %vm234_vm0, %v2638_v8 }
 0x175   :  { %2009 = vmatpush1.bf16.msra.mxu1 %v2008_v9  ;;  %419 = vmatprep.mubr.f32.mxu1 %v2482_v0 }
 0x176   :  { %2011 = vmatprep.subr.bf16.mxu1 %v2010_v10  ;;  %v2038_v10 = vpack.c.bf16 %v530_v4, %v528_v3 }
 0x179   :  { %2013 = vmatpush1.bf16.msra.mxu1 %v2012_v15  ;;  %v2040_v15 = vpack.c.bf16 %v529_v12, %v527_v11  ;;  %v732_v12 = vld [vmem:[#allocation7 + $0x308] sm:$0xff] }
 0x17a   :  { %2015 = vmatprep.subr.bf16.mxu1 %v2014_v16  ;;  %v2042_v16 = vpack.c.bf16 %v534_v14, %v532_v13  ;;  %v734_v13 = vld [vmem:[#allocation7 + $0x318] sm:$0xff]  ;;  %v731_v14 = vld [vmem:[#allocation7 + $0x300] sm:$0xff] }
 0x17d   :  { %2017 = vmatpush1.bf16.msra.mxu1 %v2016_v21  ;;  %v2044_v21 = vpack.c.bf16 %v533_v18, %v531_v17  ;;  %v736_v17 = vld [vmem:[#allocation7 + $0x328] sm:$0xff]  ;;  %v738_v18 = vld [vmem:[#allocation7 + $0x338] sm:$0xff] }
 0x17e   :  { %2019 = vmatprep.subr.bf16.mxu1 %v2018_v22  ;;  %v2046_v22 = vpack.c.bf16 %v538_v20, %v536_v19  ;;  %v2078_v20 = vpack.c.bf16 %v738_v18, %v736_v17 }
 0x181   :  { %2021 = vmatpush1.bf16.msra.mxu1 %v2020_v27  ;;  %v2048_v27 = vpack.c.bf16 %v537_v24, %v535_v23  ;;  %v740_v23 = vld [vmem:[#allocation7 + $0x348] sm:$0xff]  ;;  %v742_v24 = vld [vmem:[#allocation7 + $0x358] sm:$0xff] }
 0x182   :  { %2023 = vmatprep.subr.bf16.mxu1 %v2022_v28  ;;  %v2050_v28 = vpack.c.bf16 %v542_v26, %v540_v25  ;;  %v2082_v26 = vpack.c.bf16 %v742_v24, %v740_v23  ;;  %v936_v24 = vld [vmem:[#allocation7 + $0x408] sm:$0xff] }
 0x185   :  { %2025 = vmatpush1.bf16.msra.mxu1 %v2024_v33  ;;  %v2052_v33 = vpack.c.bf16 %v541_v30, %v539_v29  ;;  %v744_v29 = vld [vmem:[#allocation7 + $0x368] sm:$0xff]  ;;  %v746_v30 = vld [vmem:[#allocation7 + $0x378] sm:$0xff] }
 0x186   :  { %2027 = vmatprep.subr.bf16.mxu1 %v2026_v34  ;;  %v2054_v34 = vpack.c.bf16 %v546_v32, %v544_v31  ;;  %v2086_v32 = vpack.c.bf16 %v746_v30, %v744_v29 }
 0x189   :  { %2029 = vmatpush1.bf16.msra.mxu1 %v2028_v37  ;;  %v548_v37 = vld [vmem:[#allocation7 + $0x2a8] sm:$0xff] }
 0x18a   :  { %2031 = vmatprep.subr.bf16.mxu1 %v2030_v40  ;;  %v2058_v40 = vpack.c.bf16 %v550_v38, %v548_v37  ;;  %v2090_v38 = vpack.c.bf16 %v750_v36, %v748_v35 }
 0x18d   :  { %2033 = vmatpush1.bf16.msra.mxu1 %v2032_v43  ;;  %v552_v43 = vld [vmem:[#allocation7 + $0x2c8] sm:$0xff] }
 0x18e   :  { %v2062_v47 = vpack.c.bf16 %v554_v44, %v552_v43  ;;  %v2094_v44 = vpack.c.bf16 %v754_v42, %v752_v41 }
 0x243   :  { %v307_v51 = vpop.f32.mrb[0].mxu1 }
 0x244   :  { %v308_v52 = vadd.f32 %v307_v51, %v227_v49  ;;  %v309_v53 = vpop.f32.mrb[1].mxu1 }
 0x245   :  { %v310_v54 = vadd.f32 %v309_v53, %v231_v50  ;;  %v558_v53 = vld [vmem:[#allocation7 + $0x2f8] sm:$0xff] }
 0x246   :  { %v318_v55 = vmax.f32 %v308_v52, 0.0  ;;  %v556_v52 = vld [vmem:[#allocation7 + $0x2e8] sm:$0xff] }
 0x247   :  { %v313_v56 = vpop.f32.mrb[2].mxu1 }
 0x248   :  { %v320_v57 = vadd.f32 %v318_v55, %v310_v54  ;;  %v314_v58 = vadd.f32 %v313_v56, %v227_v49  ;;  %v315_v59 = vpop.f32.mrb[3].mxu1  ;;  %v551_v49 = vld [vmem:[#allocation7 + $0x2c0] sm:$0xff]  ;;  %v2066_v54 = vpack.c.bf16 %v558_v53, %v556_v52  ;;  %v557_v56 = vld [vmem:[#allocation7 + $0x2f0] sm:$0xff] }
 0x249   :  { %v316_v60 = vadd.f32 %v315_v59, %v231_v50  ;;  %v553_v50 = vld [vmem:[#allocation7 + $0x2d0] sm:$0xff]  ;;  %v555_v55 = vld [vmem:[#allocation7 + $0x2e0] sm:$0xff] }
 0x24a   :  { %v319_v61 = vmax.f32 %v314_v58, 0.0  ;;  %420 = vmatmul.mubr.f32.vlgmr.msra.gmra.mrb[4].mxu1 %v320_v57  ;;  %v2064_v51 = vpack.c.bf16 %v553_v50, %v551_v49  ;;  %v2068_v57 = vpack.c.bf16 %v557_v56, %v555_v55  ;;  %v433_v58 = vld [vmem:[#allocation8 + $0x2] sm:$0x3]  ;;  %v756_v49 = vld [vmem:[#allocation7 + $0x3c8] sm:$0xff]  ;;  %v758_v50 = vld [vmem:[#allocation7 + $0x3d8] sm:$0xff] }
 0x24b   :  { %425 = vmatprep.mubr.f32.mxu1 %v2482_v0  ;;  %v438_v59 = vrot.slane %v433_v58, %v2643_v46  ;;  %v2098_v52 = vpack.c.bf16 %v758_v50, %v756_v49 }
 0x24c   :  { %v321_v62 = vadd.f32 %v319_v61, %v316_v60  ;;  %v442_v60 = vrot.slane %v433_v58, %v2645_v48 }
 0x24e   :  { %426 = vmatmul.mubr.f32.gmra.mrb[6].mxu1 %v321_v62 }
 0x24f   :  { %509 = vmatprep.mubr.f32.mxu1 %v2482_v0 }
 0x31d   :  { %v421_v63 = vpop.f32.mrb[4].mxu1 }
 0x31e   :  { %v423_v2 = vpop.f32.mrb[5].mxu1 }
 0x321   :  { %v427_v5 = vpop.f32.mrb[6].mxu1 }
 0x322   :  { %v2036_v6 = vpack.c.bf16 %v427_v5, %v421_v63  ;;  %v429_v7 = vpop.f32.mrb[7].mxu1 }
 0x323   :  { %v2034_v9 = vpack.c.bf16 %v429_v7, %v423_v2 }
 0x325   :  { %2035 = vmatprep.subr.bf16.mxu1 %v2034_v9 }
 0x326   :  { %2037 = vmatpush1.bf16.msra.mxu1 %v2036_v6 }
 0x327   :  { %2039 = vmatprep.subr.bf16.mxu1 %v2038_v10 }
 0x329   :  { %1834 = vmatmul.mubr.msk.f32.vlgmr.msra.gmra.mrb[8].mxu1 %vm234_vm0, %v2633_v1 }
 0x32a   :  { %515 = vmatprep.mubr.f32.mxu1 %v2482_v0  ;;  %2041 = vmatpush1.bf16.msra.mxu1 %v2040_v15  ;;  %v2074_v15 = vpack.c.bf16 %v734_v13, %v732_v12 }
 0x32b   :  { %2043 = vmatprep.subr.bf16.mxu1 %v2042_v16  ;;  %v733_v16 = vld [vmem:[#allocation7 + $0x310] sm:$0xff] }
 0x32c   :  { %v2076_v19 = vpack.c.bf16 %v733_v16, %v731_v14  ;;  %2075 = vmatprep.subr.bf16.mxu0 %v2074_v15 }
 0x32d   :  { %1835 = vmatmul.mubr.msk.f32.gmra.mrb[10].mxu1 %vm234_vm0, %v2638_v8 }
 0x32e   :  { %2045 = vmatpush1.bf16.msra.mxu1 %v2044_v21  ;;  %623 = vmatprep.mubr.f32.mxu1 %v2482_v0  ;;  %v735_v21 = vld [vmem:[#allocation7 + $0x320] sm:$0xff] }
 0x32f   :  { %2047 = vmatprep.subr.bf16.mxu1 %v2046_v22  ;;  %v737_v22 = vld [vmem:[#allocation7 + $0x330] sm:$0xff]  ;;  %2077 = vmatpush1.bf16.msra.mxu0 %v2076_v19 }
 0x330   :  { %v2080_v25 = vpack.c.bf16 %v737_v22, %v735_v21  ;;  %2079 = vmatprep.subr.bf16.mxu0 %v2078_v20 }
 0x332   :  { %2049 = vmatpush1.bf16.msra.mxu1 %v2048_v27  ;;  %v739_v27 = vld [vmem:[#allocation7 + $0x340] sm:$0xff] }
 0x333   :  { %2051 = vmatprep.subr.bf16.mxu1 %v2050_v28  ;;  %v741_v28 = vld [vmem:[#allocation7 + $0x350] sm:$0xff]  ;;  %2081 = vmatpush1.bf16.msra.mxu0 %v2080_v25  ;;  %v938_v25 = vld [vmem:[#allocation7 + $0x418] sm:$0xff] }
 0x334   :  { %v2084_v31 = vpack.c.bf16 %v741_v28, %v739_v27  ;;  %2083 = vmatprep.subr.bf16.mxu0 %v2082_v26  ;;  %v2110_v30 = vpack.c.bf16 %v938_v25, %v936_v24 }
 0x336   :  { %2053 = vmatpush1.bf16.msra.mxu1 %v2052_v33  ;;  %v743_v33 = vld [vmem:[#allocation7 + $0x360] sm:$0xff] }
 0x337   :  { %2055 = vmatprep.subr.bf16.mxu1 %v2054_v34  ;;  %v745_v34 = vld [vmem:[#allocation7 + $0x370] sm:$0xff]  ;;  %2085 = vmatpush1.bf16.msra.mxu0 %v2084_v31  ;;  %v935_v31 = vld [vmem:[#allocation7 + $0x400] sm:$0xff] }
 0x338   :  { %v2088_v37 = vpack.c.bf16 %v745_v34, %v743_v33  ;;  %2087 = vmatprep.subr.bf16.mxu0 %v2086_v32  ;;  %v937_v32 = vld [vmem:[#allocation7 + $0x410] sm:$0xff]  ;;  %v940_v33 = vld [vmem:[#allocation7 + $0x428] sm:$0xff]  ;;  %v942_v34 = vld [vmem:[#allocation7 + $0x438] sm:$0xff] }
 0x339   :  { %v2112_v35 = vpack.c.bf16 %v937_v32, %v935_v31  ;;  %v2114_v36 = vpack.c.bf16 %v942_v34, %v940_v33  ;;  %v1140_v34 = vld [vmem:[#allocation7 + $0x508] sm:$0xff] }
 0x33a   :  { %2057 = vmatpush1.bf16.msra.mxu1 %v2056_v39  ;;  %v747_v39 = vld [vmem:[#allocation7 + $0x380] sm:$0xff] }
 0x33b   :  { %2059 = vmatprep.subr.bf16.mxu1 %v2058_v40  ;;  %v749_v40 = vld [vmem:[#allocation7 + $0x390] sm:$0xff]  ;;  %2089 = vmatpush1.bf16.msra.mxu0 %v2088_v37  ;;  %v939_v37 = vld [vmem:[#allocation7 + $0x420] sm:$0xff] }
 0x33c   :  { %v2092_v43 = vpack.c.bf16 %v749_v40, %v747_v39  ;;  %2091 = vmatprep.subr.bf16.mxu0 %v2090_v38  ;;  %v941_v38 = vld [vmem:[#allocation7 + $0x430] sm:$0xff]  ;;  %v944_v39 = vld [vmem:[#allocation7 + $0x448] sm:$0xff]  ;;  %v946_v40 = vld [vmem:[#allocation7 + $0x458] sm:$0xff] }
 0x33d   :  { %v2116_v41 = vpack.c.bf16 %v941_v38, %v939_v37  ;;  %v2118_v42 = vpack.c.bf16 %v946_v40, %v944_v39 }
 0x33e   :  { %2061 = vmatpush1.bf16.msra.mxu1 %v2060_v45  ;;  %v751_v45 = vld [vmem:[#allocation7 + $0x3a0] sm:$0xff] }
 0x33f   :  { %2063 = vmatprep.subr.bf16.mxu1 %v2062_v47  ;;  %v753_v47 = vld [vmem:[#allocation7 + $0x3b0] sm:$0xff]  ;;  %2093 = vmatpush1.bf16.msra.mxu0 %v2092_v43  ;;  %v943_v43 = vld [vmem:[#allocation7 + $0x440] sm:$0xff] }
 0x340   :  { %2095 = vmatprep.subr.bf16.mxu0 %v2094_v44  ;;  %v945_v44 = vld [vmem:[#allocation7 + $0x450] sm:$0xff] }
 0x341   :  { %v2120_v49 = vpack.c.bf16 %v945_v44, %v943_v43  ;;  %v1144_v43 = vld [vmem:[#allocation7 + $0x528] sm:$0xff]  ;;  %v1146_v44 = vld [vmem:[#allocation7 + $0x538] sm:$0xff] }
 0x342   :  { %2065 = vmatpush1.bf16.msra.mxu1 %v2064_v51  ;;  %v2096_v51 = vpack.c.bf16 %v753_v47, %v751_v45  ;;  %v948_v45 = vld [vmem:[#allocation7 + $0x468] sm:$0xff]  ;;  %v950_v47 = vld [vmem:[#allocation7 + $0x478] sm:$0xff] }
 0x343   :  { %2067 = vmatprep.subr.bf16.mxu1 %v2066_v54  ;;  %v2122_v50 = vpack.c.bf16 %v950_v47, %v948_v45  ;;  %v2150_v47 = vpack.c.bf16 %v1146_v44, %v1144_v43  ;;  %v1344_v44 = vld [vmem:[#allocation7 + $0x608] sm:$0xff] }
 0x344   :  { %2097 = vmatpush1.bf16.msra.mxu0 %v2096_v51  ;;  %v947_v51 = vld [vmem:[#allocation7 + $0x460] sm:$0xff] }
 0x345   :  { %2099 = vmatprep.subr.bf16.mxu0 %v2098_v52  ;;  %v949_v52 = vld [vmem:[#allocation7 + $0x470] sm:$0xff] }
 0x346   :  { %2069 = vmatpush1.bf16.msra.mxu1 %v2068_v57 }
 0x3fc   :  { %v511_v61 = vpop.f32.mrb[8].mxu1 }
 0x3fd   :  { %v512_v62 = vadd.f32 %v511_v61, %v438_v59  ;;  %v513_v63 = vpop.f32.mrb[9].mxu1 }
 0x3fe   :  { %v514_v2 = vadd.f32 %v513_v63, %v442_v60  ;;  %v762_v63 = vld [vmem:[#allocation7 + $0x3f8] sm:$0xff] }
 0x3ff   :  { %v522_v3 = vmax.f32 %v512_v62, 0.0  ;;  %v760_v62 = vld [vmem:[#allocation7 + $0x3e8] sm:$0xff] }
 0x400   :  { %v517_v4 = vpop.f32.mrb[10].mxu1 }
 0x401   :  { %v524_v5 = vadd.f32 %v522_v3, %v514_v2  ;;  %v518_v6 = vadd.f32 %v517_v4, %v438_v59  ;;  %v519_v7 = vpop.f32.mrb[11].mxu1  ;;  %v755_v59 = vld [vmem:[#allocation7 + $0x3c0] sm:$0xff]  ;;  %v2102_v2 = vpack.c.bf16 %v762_v63, %v760_v62  ;;  %v761_v4 = vld [vmem:[#allocation7 + $0x3f0] sm:$0xff] }
 0x402   :  { %v520_v9 = vadd.f32 %v519_v7, %v442_v60  ;;  %v757_v60 = vld [vmem:[#allocation7 + $0x3d0] sm:$0xff]  ;;  %v759_v3 = vld [vmem:[#allocation7 + $0x3e0] sm:$0xff] }
 0x403   :  { %v523_v10 = vmax.f32 %v518_v6, 0.0  ;;  %624 = vmatmul.mubr.f32.vlgmr.msra.gmra.mrb[12].mxu1 %v524_v5  ;;  %v2100_v61 = vpack.c.bf16 %v757_v60, %v755_v59  ;;  %v2104_v5 = vpack.c.bf16 %v761_v4, %v759_v3  ;;  %v637_v6 = vld [vmem:[#allocation8 + $0x4] sm:$0x3]  ;;  %v956_v59 = vld [vmem:[#allocation7 + $0x4a8] sm:$0xff]  ;;  %v958_v60 = vld [vmem:[#allocation7 + $0x4b8] sm:$0xff] }
 0x404   :  { %629 = vmatprep.mubr.f32.mxu1 %v2482_v0  ;;  %v642_v7 = vrot.slane %v637_v6, %v2643_v46  ;;  %v2130_v62 = vpack.c.bf16 %v958_v60, %v956_v59  ;;  %v955_v63 = vld [vmem:[#allocation7 + $0x4a0] sm:$0xff]  ;;  %v960_v3 = vld [vmem:[#allocation7 + $0x4c8] sm:$0xff]  ;;  %v962_v4 = vld [vmem:[#allocation7 + $0x4d8] sm:$0xff] }
 0x405   :  { %v525_v11 = vadd.f32 %v523_v10, %v520_v9  ;;  %2101 = vmatpush1.bf16.msra.mxu0 %v2100_v61  ;;  %v646_v9 = vrot.slane %v637_v6, %v2645_v48  ;;  %v2134_v6 = vpack.c.bf16 %v962_v4, %v960_v3 }
 0x406   :  { %2103 = vmatprep.subr.bf16.mxu0 %v2102_v2  ;;  %v957_v2 = vld [vmem:[#allocation7 + $0x4b0] sm:$0xff] }
 0x407   :  { %630 = vmatmul.mubr.f32.gmra.mrb[14].mxu1 %v525_v11 }
 0x408   :  { %713 = vmatprep.mubr.f32.mxu1 %v2482_v0 }
 0x409   :  { %2105 = vmatpush1.bf16.msra.mxu0 %v2104_v5  ;;  %v2132_v5 = vpack.c.bf16 %v957_v2, %v955_v63  ;;  %v1156_v63 = vld [vmem:[#allocation7 + $0x588] sm:$0xff]  ;;  %v1158_v2 = vld [vmem:[#allocation7 + $0x598] sm:$0xff] }
 0x40a   :  { %v2162_v4 = vpack.c.bf16 %v1158_v2, %v1156_v63 }
 0x4d6   :  { %v625_v53 = vpop.f32.mrb[12].mxu1 }
 0x4d7   :  { %v627_v54 = vpop.f32.mrb[13].mxu1 }
 0x4da   :  { %v631_v55 = vpop.f32.mrb[14].mxu1 }
 0x4db   :  { %v2072_v56 = vpack.c.bf16 %v631_v55, %v625_v53  ;;  %v633_v57 = vpop.f32.mrb[15].mxu1  ;;  %v952_v53 = vld [vmem:[#allocation7 + $0x488] sm:$0xff]  ;;  %v2124_v55 = vpack.c.bf16 %v949_v52, %v947_v51  ;;  %v1150_v52 = vld [vmem:[#allocation7 + $0x558] sm:$0xff] }
 0x4dc   :  { %v2070_v58 = vpack.c.bf16 %v633_v57, %v627_v54  ;;  %v954_v54 = vld [vmem:[#allocation7 + $0x498] sm:$0xff]  ;;  %v951_v57 = vld [vmem:[#allocation7 + $0x480] sm:$0xff]  ;;  %v1148_v51 = vld [vmem:[#allocation7 + $0x548] sm:$0xff] }
 0x4de   :  { %2071 = vmatprep.subr.bf16.mxu1 %v2070_v58  ;;  %v953_v58 = vld [vmem:[#allocation7 + $0x490] sm:$0xff] }
 0x4df   :  { %2073 = vmatpush1.bf16.msra.mxu1 %v2072_v56  ;;  %v2126_v56 = vpack.c.bf16 %v954_v54, %v952_v53  ;;  %v2128_v61 = vpack.c.bf16 %v953_v58, %v951_v57  ;;  %v2154_v54 = vpack.c.bf16 %v1150_v52, %v1148_v51  ;;  %v1152_v57 = vld [vmem:[#allocation7 + $0x568] sm:$0xff]  ;;  %v1154_v58 = vld [vmem:[#allocation7 + $0x578] sm:$0xff] }
 0x4e0   :  { %v2158_v60 = vpack.c.bf16 %v1154_v58, %v1152_v57 }
 0x4e2   :  { %1836 = vmatmul.mubr.msk.f32.vlgmr.msra.gmra.mrb[16].mxu1 %vm234_vm0, %v2633_v1 }
 0x4e3   :  { %719 = vmatprep.mubr.f32.mxu1 %v2482_v0 }
 0x4e6   :  { %1837 = vmatmul.mubr.msk.f32.gmra.mrb[18].mxu1 %vm234_vm0, %v2638_v8 }
 0x4e7   :  { %917 = vmatprep.mubr.f32.mxu1 %v2482_v0 }
 0x5b5   :  { %v715_v10 = vpop.f32.mrb[16].mxu1 }
 0x5b6   :  { %v716_v11 = vadd.f32 %v715_v10, %v642_v7  ;;  %v717_v12 = vpop.f32.mrb[17].mxu1 }
 0x5b7   :  { %v718_v13 = vadd.f32 %v717_v12, %v646_v9  ;;  %v966_v12 = vld [vmem:[#allocation7 + $0x4f8] sm:$0xff] }
 0x5b8   :  { %v726_v14 = vmax.f32 %v716_v11, 0.0  ;;  %v964_v11 = vld [vmem:[#allocation7 + $0x4e8] sm:$0xff] }
 0x5b9   :  { %v721_v15 = vpop.f32.mrb[18].mxu1 }
 0x5ba   :  { %v728_v16 = vadd.f32 %v726_v14, %v718_v13  ;;  %v722_v17 = vadd.f32 %v721_v15, %v642_v7  ;;  %v723_v18 = vpop.f32.mrb[19].mxu1  ;;  %v959_v7 = vld [vmem:[#allocation7 + $0x4c0] sm:$0xff]  ;;  %v2138_v13 = vpack.c.bf16 %v966_v12, %v964_v11  ;;  %v965_v15 = vld [vmem:[#allocation7 + $0x4f0] sm:$0xff] }
 0x5bb   :  { %v724_v19 = vadd.f32 %v723_v18, %v646_v9  ;;  %v961_v9 = vld [vmem:[#allocation7 + $0x4d0] sm:$0xff]  ;;  %v963_v14 = vld [vmem:[#allocation7 + $0x4e0] sm:$0xff] }
 0x5bc   :  { %v727_v20 = vmax.f32 %v722_v17, 0.0  ;;  %828 = vmatmul.mubr.f32.vlgmr.msra.gmra.mrb[4].mxu0 %v728_v16  ;;  %v2136_v10 = vpack.c.bf16 %v961_v9, %v959_v7  ;;  %v2140_v16 = vpack.c.bf16 %v965_v15, %v963_v14  ;;  %v841_v17 = vld [vmem:[#allocation8 + $0x6] sm:$0x3]  ;;  %v1160_v7 = vld [vmem:[#allocation7 + $0x5a8] sm:$0xff]  ;;  %v1162_v9 = vld [vmem:[#allocation7 + $0x5b8] sm:$0xff] }
 0x5bd   :  { %833 = vmatprep.mubr.f32.mxu0 %v2482_v0  ;;  %v846_v18 = vrot.slane %v841_v17, %v2643_v46  ;;  %v2166_v11 = vpack.c.bf16 %v1162_v9, %v1160_v7  ;;  %v1159_v12 = vld [vmem:[#allocation7 + $0x5a0] sm:$0xff]  ;;  %v1164_v14 = vld [vmem:[#allocation7 + $0x5c8] sm:$0xff]  ;;  %v1166_v15 = vld [vmem:[#allocation7 + $0x5d8] sm:$0xff] }
 0x5be   :  { %v729_v21 = vadd.f32 %v727_v20, %v724_v19  ;;  %v850_v19 = vrot.slane %v841_v17, %v2645_v48  ;;  %v2170_v17 = vpack.c.bf16 %v1166_v15, %v1164_v14  ;;  %v1359_v15 = vld [vmem:[#allocation7 + $0x680] sm:$0xff] }
 0x5c0   :  { %834 = vmatmul.mubr.f32.gmra.mrb[6].mxu0 %v729_v21 }
 0x5c1   :  { %1121 = vmatprep.mubr.f32.mxu0 %v2482_v0 }
 0x68f   :  { %v829_v22 = vpop.f32.mrb[4].mxu0 }
 0x690   :  { %v831_v23 = vpop.f32.mrb[5].mxu0 }
 0x693   :  { %v835_v26 = vpop.f32.mrb[6].mxu0 }
 0x694   :  { %v2108_v27 = vpack.c.bf16 %v835_v26, %v829_v22  ;;  %v837_v28 = vpop.f32.mrb[7].mxu0 }
 0x695   :  { %v2106_v29 = vpack.c.bf16 %v837_v28, %v831_v23 }
 0x697   :  { %2107 = vmatprep.subr.bf16.mxu1 %v2106_v29 }
 0x698   :  { %2109 = vmatpush1.bf16.msra.mxu1 %v2108_v27 }
 0x699   :  { %2111 = vmatprep.subr.bf16.mxu1 %v2110_v30 }
 0x69b   :  { %1838 = vmatmul.mubr.msk.f32.vlgmr.msra.gmra.mrb[20].mxu1 %vm234_vm0, %v2633_v1 }
 0x69c   :  { %923 = vmatprep.mubr.f32.mxu1 %v2482_v0  ;;  %2113 = vmatpush1.bf16.msra.mxu1 %v2112_v35  ;;  %v1142_v35 = vld [vmem:[#allocation7 + $0x518] sm:$0xff] }
 0x69d   :  { %2115 = vmatprep.subr.bf16.mxu1 %v2114_v36  ;;  %v2146_v40 = vpack.c.bf16 %v1142_v35, %v1140_v34 }
 0x69f   :  { %1839 = vmatmul.mubr.msk.f32.gmra.mrb[22].mxu1 %vm234_vm0, %v2638_v8 }
 0x6a0   :  { %2117 = vmatpush1.bf16.msra.mxu1 %v2116_v41  ;;  %1031 = vmatprep.mubr.f32.mxu1 %v2482_v0  ;;  %v1139_v41 = vld [vmem:[#allocation7 + $0x500] sm:$0xff] }
 0x6a1   :  { %2119 = vmatprep.subr.bf16.mxu1 %v2118_v42  ;;  %v1141_v42 = vld [vmem:[#allocation7 + $0x510] sm:$0xff] }
 0x6a2   :  { %v2148_v45 = vpack.c.bf16 %v1141_v42, %v1139_v41 }
 0x6a4   :  { %2121 = vmatpush1.bf16.msra.mxu1 %v2120_v49  ;;  %v1143_v49 = vld [vmem:[#allocation7 + $0x520] sm:$0xff] }
 0x6a5   :  { %2123 = vmatprep.subr.bf16.mxu1 %v2122_v50  ;;  %v1145_v50 = vld [vmem:[#allocation7 + $0x530] sm:$0xff] }
 0x6a6   :  { %v2152_v53 = vpack.c.bf16 %v1145_v50, %v1143_v49 }
 0x6a8   :  { %2125 = vmatpush1.bf16.msra.mxu1 %v2124_v55  ;;  %v1147_v55 = vld [vmem:[#allocation7 + $0x540] sm:$0xff] }
 0x6a9   :  { %2127 = vmatprep.subr.bf16.mxu1 %v2126_v56  ;;  %v1149_v56 = vld [vmem:[#allocation7 + $0x550] sm:$0xff] }
 0x6aa   :  { %v2156_v59 = vpack.c.bf16 %v1149_v56, %v1147_v55  ;;  %v1348_v55 = vld [vmem:[#allocation7 + $0x628] sm:$0xff]  ;;  %v1350_v56 = vld [vmem:[#allocation7 + $0x638] sm:$0xff] }
 0x6ab   :  { %v2186_v58 = vpack.c.bf16 %v1350_v56, %v1348_v55  ;;  %v1562_v55 = vld [vmem:[#allocation11] sm:$0xff]  ;;  %v1563_v56 = vld [vmem:[#allocation11 + $0x8] sm:$0xff] }
 0x6ac   :  { %2129 = vmatpush1.bf16.msra.mxu1 %v2128_v61  ;;  %v1151_v61 = vld [vmem:[#allocation7 + $0x560] sm:$0xff] }
 0x6ad   :  { %2131 = vmatprep.subr.bf16.mxu1 %v2130_v62  ;;  %v1153_v62 = vld [vmem:[#allocation7 + $0x570] sm:$0xff] }
 0x6ae   :  { %v2160_v3 = vpack.c.bf16 %v1153_v62, %v1151_v61  ;;  %v1352_v61 = vld [vmem:[#allocation7 + $0x648] sm:$0xff]  ;;  %v1354_v62 = vld [vmem:[#allocation7 + $0x658] sm:$0xff] }
 0x6af   :  { %v2190_v2 = vpack.c.bf16 %v1354_v62, %v1352_v61  ;;  %v2218_v61 = vpack.c.bf16 %v1563_v56, %v1562_v55  ;;  %v1564_v62 = vld [vmem:[#allocation11 + $0x10] sm:$0xff] }
 0x6b0   :  { %2133 = vmatpush1.bf16.msra.mxu1 %v2132_v5  ;;  %v1155_v5 = vld [vmem:[#allocation7 + $0x580] sm:$0xff] }
 0x6b1   :  { %2135 = vmatprep.subr.bf16.mxu1 %v2134_v6  ;;  %v1157_v6 = vld [vmem:[#allocation7 + $0x590] sm:$0xff] }
 0x6b4   :  { %2137 = vmatpush1.bf16.msra.mxu1 %v2136_v10  ;;  %v2164_v10 = vpack.c.bf16 %v1157_v6, %v1155_v5  ;;  %v1356_v5 = vld [vmem:[#allocation7 + $0x668] sm:$0xff]  ;;  %v1358_v6 = vld [vmem:[#allocation7 + $0x678] sm:$0xff] }
 0x6b5   :  { %2139 = vmatprep.subr.bf16.mxu1 %v2138_v13  ;;  %v1161_v13 = vld [vmem:[#allocation7 + $0x5b0] sm:$0xff]  ;;  %v2194_v9 = vpack.c.bf16 %v1358_v6, %v1356_v5  ;;  %v1568_v6 = vld [vmem:[#allocation11 + $0x30] sm:$0xff] }
 0x6b8   :  { %2141 = vmatpush1.bf16.msra.mxu1 %v2140_v16  ;;  %v2168_v16 = vpack.c.bf16 %v1161_v13, %v1159_v12  ;;  %v1362_v12 = vld [vmem:[#allocation7 + $0x698] sm:$0xff] }
 0x76e   :  { %v919_v20 = vpop.f32.mrb[20].mxu1 }
 0x76f   :  { %v920_v21 = vadd.f32 %v919_v20, %v846_v18  ;;  %v921_v22 = vpop.f32.mrb[21].mxu1 }
 0x770   :  { %v922_v23 = vadd.f32 %v921_v22, %v850_v19  ;;  %v1170_v22 = vld [vmem:[#allocation7 + $0x5f8] sm:$0xff] }
 0x771   :  { %v930_v24 = vmax.f32 %v920_v21, 0.0  ;;  %v1168_v21 = vld [vmem:[#allocation7 + $0x5e8] sm:$0xff] }
 0x772   :  { %v925_v25 = vpop.f32.mrb[22].mxu1 }
 0x773   :  { %v932_v26 = vadd.f32 %v930_v24, %v922_v23  ;;  %v926_v27 = vadd.f32 %v925_v25, %v846_v18  ;;  %v927_v28 = vpop.f32.mrb[23].mxu1  ;;  %v1163_v18 = vld [vmem:[#allocation7 + $0x5c0] sm:$0xff]  ;;  %v2174_v23 = vpack.c.bf16 %v1170_v22, %v1168_v21  ;;  %v1169_v25 = vld [vmem:[#allocation7 + $0x5f0] sm:$0xff]  ;;  %v1368_v22 = vld [vmem:[#allocation7 + $0x6c8] sm:$0xff] }
 0x774   :  { %v928_v29 = vadd.f32 %v927_v28, %v850_v19  ;;  %v1165_v19 = vld [vmem:[#allocation7 + $0x5d0] sm:$0xff]  ;;  %v1167_v24 = vld [vmem:[#allocation7 + $0x5e0] sm:$0xff] }
 0x775   :  { %v931_v30 = vmax.f32 %v926_v27, 0.0  ;;  %1032 = vmatmul.mubr.f32.vlgmr.msra.gmra.mrb[24].mxu1 %v932_v26  ;;  %v2172_v20 = vpack.c.bf16 %v1165_v19, %v1163_v18  ;;  %v2176_v26 = vpack.c.bf16 %v1169_v25, %v1167_v24  ;;  %v1045_v27 = vld [vmem:[#allocation8 + $0x8] sm:$0x3]  ;;  %v1366_v18 = vld [vmem:[#allocation7 + $0x6b8] sm:$0xff]  ;;  %v1365_v21 = vld [vmem:[#allocation7 + $0x6b0] sm:$0xff] }
 0x776   :  { %1037 = vmatprep.mubr.f32.mxu1 %v2482_v0  ;;  %v1050_v28 = vrot.slane %v1045_v27, %v2643_v46 }
 0x777   :  { %v933_v31 = vadd.f32 %v931_v30, %v928_v29  ;;  %v1054_v29 = vrot.slane %v1045_v27, %v2645_v48  ;;  %v1369_v27 = vld [vmem:[#allocation7 + $0x6d0] sm:$0xff] }
 0x779   :  { %1038 = vmatmul.mubr.f32.gmra.mrb[26].mxu1 %v933_v31 }
 0x77a   :  { %1325 = vmatprep.mubr.f32.mxu1 %v2482_v0 }
 0x848   :  { %v1033_v32 = vpop.f32.mrb[24].mxu1 }
 0x849   :  { %v1035_v33 = vpop.f32.mrb[25].mxu1 }
 0x84c   :  { %v1039_v36 = vpop.f32.mrb[26].mxu1 }
 0x84d   :  { %v2144_v37 = vpack.c.bf16 %v1039_v36, %v1033_v32  ;;  %v1041_v38 = vpop.f32.mrb[27].mxu1 }
 0x84e   :  { %v2142_v39 = vpack.c.bf16 %v1041_v38, %v1035_v33 }
 0x850   :  { %2143 = vmatprep.subr.bf16.mxu0 %v2142_v39 }
 0x851   :  { %2145 = vmatpush1.bf16.msra.mxu0 %v2144_v37 }
 0x852   :  { %2147 = vmatprep.subr.bf16.mxu0 %v2146_v40 }
 0x854   :  { %1840 = vmatmul.mubr.msk.f32.vlgmr.msra.gmra.mrb[8].mxu0 %vm234_vm0, %v2633_v1 }
 0x855   :  { %1127 = vmatprep.mubr.f32.mxu0 %v2482_v0  ;;  %2149 = vmatpush1.bf16.msra.mxu0 %v2148_v45  ;;  %v1346_v45 = vld [vmem:[#allocation7 + $0x618] sm:$0xff] }
 0x856   :  { %2151 = vmatprep.subr.bf16.mxu0 %v2150_v47  ;;  %v2182_v52 = vpack.c.bf16 %v1346_v45, %v1344_v44 }
 0x858   :  { %1841 = vmatmul.mubr.msk.f32.gmra.mrb[10].mxu0 %vm234_vm0, %v2638_v8 }
 0x859   :  { %2153 = vmatpush1.bf16.msra.mxu0 %v2152_v53  ;;  %1235 = vmatprep.mubr.f32.mxu0 %v2482_v0  ;;  %v1343_v53 = vld [vmem:[#allocation7 + $0x600] sm:$0xff] }
 0x85a   :  { %2155 = vmatprep.subr.bf16.mxu0 %v2154_v54  ;;  %v1345_v54 = vld [vmem:[#allocation7 + $0x610] sm:$0xff] }
 0x85b   :  { %v2184_v57 = vpack.c.bf16 %v1345_v54, %v1343_v53 }
 0x85d   :  { %2157 = vmatpush1.bf16.msra.mxu0 %v2156_v59  ;;  %v1347_v59 = vld [vmem:[#allocation7 + $0x620] sm:$0xff] }
 0x85e   :  { %2159 = vmatprep.subr.bf16.mxu0 %v2158_v60  ;;  %v1349_v60 = vld [vmem:[#allocation7 + $0x630] sm:$0xff] }
 0x85f   :  { %v2188_v63 = vpack.c.bf16 %v1349_v60, %v1347_v59 }
 0x861   :  { %2161 = vmatpush1.bf16.msra.mxu0 %v2160_v3  ;;  %v1351_v3 = vld [vmem:[#allocation7 + $0x640] sm:$0xff] }
 0x862   :  { %2163 = vmatprep.subr.bf16.mxu0 %v2162_v4  ;;  %v1353_v4 = vld [vmem:[#allocation7 + $0x650] sm:$0xff] }
 0x863   :  { %v2192_v7 = vpack.c.bf16 %v1353_v4, %v1351_v3  ;;  %v1566_v3 = vld [vmem:[#allocation11 + $0x20] sm:$0xff]  ;;  %v1567_v4 = vld [vmem:[#allocation11 + $0x28] sm:$0xff] }
 0x864   :  { %v2226_v5 = vpack.c.bf16 %v1567_v4, %v1566_v3 }
 0x865   :  { %2165 = vmatpush1.bf16.msra.mxu0 %v2164_v10  ;;  %v1357_v10 = vld [vmem:[#allocation7 + $0x670] sm:$0xff] }
 0x866   :  { %2167 = vmatprep.subr.bf16.mxu0 %v2166_v11  ;;  %v1360_v11 = vld [vmem:[#allocation7 + $0x688] sm:$0xff] }
 0x867   :  { %v2198_v14 = vpack.c.bf16 %v1362_v12, %v1360_v11  ;;  %v1570_v11 = vld [vmem:[#allocation11 + $0x40] sm:$0xff]  ;;  %v1571_v12 = vld [vmem:[#allocation11 + $0x48] sm:$0xff] }
 0x869   :  { %2169 = vmatpush1.bf16.msra.mxu0 %v2168_v16  ;;  %v1361_v16 = vld [vmem:[#allocation7 + $0x690] sm:$0xff] }
 0x86a   :  { %2171 = vmatprep.subr.bf16.mxu0 %v2170_v17  ;;  %v1364_v17 = vld [vmem:[#allocation7 + $0x6a8] sm:$0xff] }
 0x86b   :  { %v2202_v19 = vpack.c.bf16 %v1366_v18, %v1364_v17  ;;  %v1575_v17 = vld [vmem:[#allocation11 + $0x68] sm:$0xff] }
 0x86d   :  { %2173 = vmatpush1.bf16.msra.mxu0 %v2172_v20  ;;  %v1363_v20 = vld [vmem:[#allocation7 + $0x6a0] sm:$0xff] }
 0x86e   :  { %2175 = vmatprep.subr.bf16.mxu0 %v2174_v23  ;;  %v1370_v23 = vld [vmem:[#allocation7 + $0x6d8] sm:$0xff]  ;;  %v2204_v24 = vpack.c.bf16 %v1365_v21, %v1363_v20  ;;  %v1546_v21 = vld [vmem:[#allocation10] sm:$0xff] }
 0x86f   :  { %v2206_v25 = vpack.c.bf16 %v1370_v23, %v1368_v22  ;;  %v1547_v22 = vld [vmem:[#allocation10 + $0x8] sm:$0xff] }
 0x870   :  { %v2250_v23 = vpack.c.bf16 %v1547_v22, %v1546_v21 }
 0x871   :  { %2177 = vmatpush1.bf16.msra.mxu0 %v2176_v26  ;;  %v1367_v26 = vld [vmem:[#allocation7 + $0x6c0] sm:$0xff] }
 0x927   :  { %v1123_v30 = vpop.f32.mrb[8].mxu0 }
 0x928   :  { %v1124_v31 = vadd.f32 %v1123_v30, %v1050_v28  ;;  %v1125_v32 = vpop.f32.mrb[9].mxu0  ;;  %v1374_v30 = vld [vmem:[#allocation7 + $0x6f8] sm:$0xff] }
 0x929   :  { %v1126_v33 = vadd.f32 %v1125_v32, %v1054_v29  ;;  %v1371_v32 = vld [vmem:[#allocation7 + $0x6e0] sm:$0xff] }
 0x92a   :  { %v1134_v34 = vmax.f32 %v1124_v31, 0.0 }
 0x92b   :  { %v1129_v35 = vpop.f32.mrb[10].mxu0 }
 0x92c   :  { %v1136_v36 = vadd.f32 %v1134_v34, %v1126_v33  ;;  %v1130_v37 = vadd.f32 %v1129_v35, %v1050_v28  ;;  %v1131_v38 = vpop.f32.mrb[11].mxu0  ;;  %v2208_v28 = vpack.c.bf16 %v1369_v27, %v1367_v26  ;;  %v1373_v33 = vld [vmem:[#allocation7 + $0x6f0] sm:$0xff]  ;;  %v1249_v35 = vld [vmem:[#allocation8 + $0xa] sm:$0x3] }
 0x92d   :  { %v1132_v39 = vadd.f32 %v1131_v38, %v1054_v29  ;;  %v1372_v29 = vld [vmem:[#allocation7 + $0x6e8] sm:$0xff]  ;;  %v2212_v34 = vpack.c.bf16 %v1373_v33, %v1371_v32 }
 0x92e   :  { %v1135_v40 = vmax.f32 %v1130_v37, 0.0  ;;  %1236 = vmatmul.mubr.f32.vlgmr.msra.gmra.mrb[12].mxu0 %v1136_v36  ;;  %v2210_v31 = vpack.c.bf16 %v1374_v30, %v1372_v29  ;;  %v1254_v36 = vrot.slane %v1249_v35, %v2643_v46  ;;  %v1258_v37 = vrot.slane %v1249_v35, %v2645_v48  ;;  %v1550_v27 = vld [vmem:[#allocation10 + $0x20] sm:$0xff]  ;;  %v2305_v29 = vld [vmem:[#allocation5 + $0x8] sm:$0xff]  ;;  %v1553_v32 = vld [vmem:[#allocation10 + $0x38] sm:$0xff] }
 0x92f   :  { %1241 = vmatprep.mubr.f32.mxu0 %v2482_v0  ;;  %v1555_v35 = vld [vmem:[#allocation10 + $0x48] sm:$0xff] }
 0x930   :  { %v1137_v41 = vadd.f32 %v1135_v40, %v1132_v39 }
 0x932   :  { %1242 = vmatmul.mubr.f32.gmra.mrb[14].mxu0 %v1137_v41 }
 0x933   :  { %1529 = vmatprep.mubr.f32.mxu0 %v2482_v0 }
 0xa01   :  { %v1237_v42 = vpop.f32.mrb[12].mxu0 }
 0xa02   :  { %v1239_v43 = vpop.f32.mrb[13].mxu0 }
 0xa05   :  { %v1243_v47 = vpop.f32.mrb[14].mxu0 }
 0xa06   :  { %v2180_v49 = vpack.c.bf16 %v1243_v47, %v1237_v42  ;;  %v1245_v50 = vpop.f32.mrb[15].mxu0 }
 0xa07   :  { %v2178_v51 = vpack.c.bf16 %v1245_v50, %v1239_v43 }
 0xa09   :  { %2179 = vmatprep.subr.bf16.mxu1 %v2178_v51 }
 0xa0a   :  { %2181 = vmatpush1.bf16.msra.mxu1 %v2180_v49 }
 0xa0b   :  { %2183 = vmatprep.subr.bf16.mxu1 %v2182_v52  ;;  %v2302_v52 = vld [vmem:[#allocation2] sm:$0xff] }
 0xa0d   :  { %1842 = vmatmul.mubr.msk.f32.vlgmr.msra.gmra.mrb[28].mxu1 %vm234_vm0, %v2633_v1  ;;  %v1355_v1 = vld [vmem:[#allocation7 + $0x660] sm:$0xff] }
 0xa0e   :  { %1331 = vmatprep.mubr.f32.mxu1 %v2482_v0  ;;  %2185 = vmatpush1.bf16.msra.mxu1 %v2184_v57  ;;  %v2196_v13 = vpack.c.bf16 %v1357_v10, %v1355_v1  ;;  %v2304_v1 = vld [vmem:[#allocation5] sm:$0xff] }
 0xa0f   :  { %2187 = vmatprep.subr.bf16.mxu1 %v2186_v58 }
 0xa11   :  { %1843 = vmatmul.mubr.msk.f32.gmra.mrb[30].mxu1 %vm234_vm0, %v2638_v8  ;;  %v2200_v8 = vpack.c.bf16 %v1361_v16, %v1359_v15  ;;  %v1574_v16 = vld [vmem:[#allocation11 + $0x60] sm:$0xff] }
 0xa12   :  { %2189 = vmatpush1.bf16.msra.mxu1 %v2188_v63  ;;  %1439 = vmatprep.mubr.f32.mxu1 %v2482_v0  ;;  %v1565_v63 = vld [vmem:[#allocation11 + $0x18] sm:$0xff]  ;;  %v2242_v18 = vpack.c.bf16 %v1575_v17, %v1574_v16 }
 0xa13   :  { %2191 = vmatprep.subr.bf16.mxu1 %v2190_v2  ;;  %v2222_v2 = vpack.c.bf16 %v1565_v63, %v1564_v62 }
 0xa16   :  { %2193 = vmatpush1.bf16.msra.mxu1 %v2192_v7  ;;  %v1569_v7 = vld [vmem:[#allocation11 + $0x38] sm:$0xff] }
 0xa17   :  { %2195 = vmatprep.subr.bf16.mxu1 %v2194_v9  ;;  %v2703_v9 = vld [vmem:[#allocation2 + $0x8] sm:$0xff]  ;;  %v2230_v10 = vpack.c.bf16 %v1569_v7, %v1568_v6 }
 0xa1a   :  { %2197 = vmatpush1.bf16.msra.mxu1 %v2196_v13  ;;  %v1572_v13 = vld [vmem:[#allocation11 + $0x50] sm:$0xff] }
 0xa1b   :  { %2199 = vmatprep.subr.bf16.mxu1 %v2198_v14  ;;  %v1573_v14 = vld [vmem:[#allocation11 + $0x58] sm:$0xff] }
 0xa1c   :  { %v2238_v15 = vpack.c.bf16 %v1573_v14, %v1572_v13 }
 0xa1e   :  { %2201 = vmatpush1.bf16.msra.mxu1 %v2200_v8  ;;  %v1576_v8 = vld [vmem:[#allocation11 + $0x70] sm:$0xff] }
 0xa1f   :  { %2203 = vmatprep.subr.bf16.mxu1 %v2202_v19  ;;  %v1577_v19 = vld [vmem:[#allocation11 + $0x78] sm:$0xff] }
 0xa20   :  { %v2246_v20 = vpack.c.bf16 %v1577_v19, %v1576_v8 }
 0xa22   :  { %2205 = vmatpush1.bf16.msra.mxu1 %v2204_v24  ;;  %v1548_v24 = vld [vmem:[#allocation10 + $0x10] sm:$0xff] }
 0xa23   :  { %2207 = vmatprep.subr.bf16.mxu1 %v2206_v25  ;;  %v1549_v25 = vld [vmem:[#allocation10 + $0x18] sm:$0xff] }
 0xa24   :  { %v2254_v26 = vpack.c.bf16 %v1549_v25, %v1548_v24 }
 0xa26   :  { %2209 = vmatpush1.bf16.msra.mxu1 %v2208_v28  ;;  %v1551_v28 = vld [vmem:[#allocation10 + $0x28] sm:$0xff] }
 0xa27   :  { %2211 = vmatprep.subr.bf16.mxu1 %v2210_v31  ;;  %v2258_v30 = vpack.c.bf16 %v1551_v28, %v1550_v27  ;;  %v1552_v31 = vld [vmem:[#allocation10 + $0x30] sm:$0xff] }
 0xa28   :  { %v2262_v33 = vpack.c.bf16 %v1553_v32, %v1552_v31 }
 0xa2a   :  { %2213 = vmatpush1.bf16.msra.mxu1 %v2212_v34  ;;  %v1554_v34 = vld [vmem:[#allocation10 + $0x40] sm:$0xff] }
 0xae0   :  { %v1327_v38 = vpop.f32.mrb[28].mxu1 }
 0xae1   :  { %v1328_v39 = vadd.f32 %v1327_v38, %v1254_v36  ;;  %v1329_v40 = vpop.f32.mrb[29].mxu1  ;;  %v1557_v38 = vld [vmem:[#allocation10 + $0x58] sm:$0xff] }
 0xae2   :  { %v1330_v41 = vadd.f32 %v1329_v40, %v1258_v37  ;;  %v1558_v40 = vld [vmem:[#allocation10 + $0x60] sm:$0xff] }
 0xae3   :  { %v1338_v42 = vmax.f32 %v1328_v39, 0.0 }
 0xae4   :  { %v1333_v43 = vpop.f32.mrb[30].mxu1 }
 0xae5   :  { %v1340_v44 = vadd.f32 %v1338_v42, %v1330_v41  ;;  %v1334_v45 = vadd.f32 %v1333_v43, %v1254_v36  ;;  %v1335_v47 = vpop.f32.mrb[31].mxu1  ;;  %v2266_v36 = vpack.c.bf16 %v1555_v35, %v1554_v34  ;;  %v1559_v41 = vld [vmem:[#allocation10 + $0x68] sm:$0xff]  ;;  %v1560_v43 = vld [vmem:[#allocation10 + $0x70] sm:$0xff] }
 0xae6   :  { %v1336_v49 = vadd.f32 %v1335_v47, %v1258_v37  ;;  %v1556_v37 = vld [vmem:[#allocation10 + $0x50] sm:$0xff]  ;;  %v2274_v42 = vpack.c.bf16 %v1559_v41, %v1558_v40  ;;  %v1453_v47 = vld [vmem:[#allocation8 + $0xc] sm:$0x3] }
 0xae7   :  { %v1339_v50 = vmax.f32 %v1334_v45, 0.0  ;;  %1440 = vmatmul.mubr.f32.vlgmr.msra.gmra.mrb[32].mxu1 %v1340_v44  ;;  %v2270_v39 = vpack.c.bf16 %v1557_v38, %v1556_v37  ;;  %v1561_v44 = vld [vmem:[#allocation10 + $0x78] sm:$0xff] }
 0xae8   :  { %1445 = vmatprep.mubr.f32.mxu1 %v2482_v0  ;;  %v2278_v45 = vpack.c.bf16 %v1561_v44, %v1560_v43 }
 0xae9   :  { %v1341_v51 = vadd.f32 %v1339_v50, %v1336_v49  ;;  %v1458_v49 = vrot.slane %v1453_v47, %v2643_v46  ;;  %v1462_v50 = vrot.slane %v1453_v47, %v2645_v48  ;;  %v1846_v46 = vld [vmem:[%s2735_s6] ss:$0 sm:$0xff] }
 0xaeb   :  { %1446 = vmatmul.mubr.f32.gmra.mrb[34].mxu1 %v1341_v51 }
 0xaec   :  { %1963 = vmatprep.mubr.msk.f32.mxu1 %vm234_vm0, %v2302_v52 }
 0xbba   :  { %v1441_v53 = vpop.f32.mrb[32].mxu1 }
 0xbbb   :  { %v1443_v54 = vpop.f32.mrb[33].mxu1 }
 0xbbe   :  { %v1447_v57 = vpop.f32.mrb[34].mxu1 }
 0xbbf   :  { %v2216_v58 = vpack.c.bf16 %v1447_v57, %v1441_v53  ;;  %v1449_v59 = vpop.f32.mrb[35].mxu1 }
 0xbc0   :  { %v2214_v60 = vpack.c.bf16 %v1449_v59, %v1443_v54 }
 0xbc2   :  { %2215 = vmatprep.subr.bf16.mxu0 %v2214_v60 }
 0xbc3   :  { %2217 = vmatpush1.bf16.msra.mxu0 %v2216_v58 }
 0xbc4   :  { %2219 = vmatprep.subr.bf16.mxu0 %v2218_v61 }
 0xbc6   :  { %1844 = vmatmul.mubr.msk.f32.vlgmr.msra.gmra.mrb[16].mxu0 %vm234_vm0, %v2302_v52 }
 0xbc7   :  { %1535 = vmatprep.mubr.f32.mxu0 %v2482_v0  ;;  %2221 = vmatpush3.bf16.msra.mxu0 %v2218_v61  ;;  %v2234_v0 = vpack.c.bf16 %v1571_v12, %v1570_v11 }
 0xbc8   :  { %2223 = vmatprep.subr.bf16.mxu0 %v2222_v2 }
 0xbca   :  { %1845 = vmatmul.mubr.msk.f32.gmra.mrb[18].mxu0 %vm234_vm0, %v2703_v9 }
 0xbcb   :  { %2225 = vmatpush3.bf16.msra.mxu0 %v2222_v2  ;;  %1921 = vmatprep.mubr.f32.mxu0 %v2304_v1 }
 0xbcc   :  { %2227 = vmatprep.subr.bf16.mxu0 %v2226_v5 }
 0xbcf   :  { %2229 = vmatpush3.bf16.msra.mxu0 %v2226_v5 }
 0xbd0   :  { %2231 = vmatprep.subr.bf16.mxu0 %v2230_v10 }
 0xbd3   :  { %2233 = vmatpush3.bf16.msra.mxu0 %v2230_v10 }
 0xbd4   :  { %2235 = vmatprep.subr.bf16.mxu0 %v2234_v0 }
 0xbd7   :  { %2237 = vmatpush3.bf16.msra.mxu0 %v2234_v0 }
 0xbd8   :  { %2239 = vmatprep.subr.bf16.mxu0 %v2238_v15 }
 0xbdb   :  { %2241 = vmatpush3.bf16.msra.mxu0 %v2238_v15 }
 0xbdc   :  { %2243 = vmatprep.subr.bf16.mxu0 %v2242_v18 }
 0xbdf   :  { %2245 = vmatpush3.bf16.msra.mxu0 %v2242_v18 }
 0xbe0   :  { %2247 = vmatprep.subr.bf16.mxu0 %v2246_v20 }
 0xbe3   :  { %2249 = vmatpush3.bf16.msra.mxu0 %v2246_v20 }
 0xbe4   :  { %2251 = vmatprep.subr.bf16.mxu0 %v2250_v23 }
 0xbe6   :  { %1922 = vmatmul.mubr.f32.vlgmr.msra.gmra.mrb[20].mxu0 %v2305_v29 }
 0xbe7   :  { %2253 = vmatpush3.bf16.msra.mxu0 %v2250_v23 }
 0xbe8   :  { %2255 = vmatprep.subr.bf16.mxu0 %v2254_v26 }
 0xbeb   :  { %2257 = vmatpush3.bf16.msra.mxu0 %v2254_v26 }
 0xbec   :  { %2259 = vmatprep.subr.bf16.mxu0 %v2258_v30 }
 0xbef   :  { %2261 = vmatpush3.bf16.msra.mxu0 %v2258_v30 }
 0xbf0   :  { %2263 = vmatprep.subr.bf16.mxu0 %v2262_v33 }
 0xbf3   :  { %2265 = vmatpush3.bf16.msra.mxu0 %v2262_v33 }
 0xbf4   :  { %2267 = vmatprep.subr.bf16.mxu0 %v2266_v36 }
 0xbf7   :  { %2269 = vmatpush3.bf16.msra.mxu0 %v2266_v36 }
 0xbf8   :  { %2271 = vmatprep.subr.bf16.mxu0 %v2270_v39 }
 0xbfb   :  { %2273 = vmatpush3.bf16.msra.mxu0 %v2270_v39 }
 0xbfc   :  { %2275 = vmatprep.subr.bf16.mxu0 %v2274_v42 }
 0xbff   :  { %2277 = vmatpush3.bf16.msra.mxu0 %v2274_v42 }
 0xc00   :  { %2279 = vmatprep.subr.bf16.mxu0 %v2278_v45 }
 0xc03   :  { %2281 = vmatpush3.bf16.msra.mxu0 %v2278_v45 }
 0xc99   :  { %v1531_v51 = vpop.f32.mrb[16].mxu0 }
 0xc9a   :  { %v1532_v52 = vadd.f32 %v1531_v51, %v1458_v49  ;;  %v1533_v53 = vpop.f32.mrb[17].mxu0 }
 0xc9b   :  { %v1534_v54 = vadd.f32 %v1533_v53, %v1462_v50 }
 0xc9c   :  { %v1542_v55 = vmax.f32 %v1532_v52, 0.0 }
 0xc9d   :  { %v1537_v56 = vpop.f32.mrb[18].mxu0 }
 0xc9e   :  { %v1544_v57 = vadd.f32 %v1542_v55, %v1534_v54  ;;  %v1538_v58 = vadd.f32 %v1537_v56, %v1458_v49  ;;  %v1539_v59 = vpop.f32.mrb[19].mxu0 }
 0xc9f   :  { %v1540_v60 = vadd.f32 %v1539_v59, %v1462_v50 }
 0xca0   :  { %v1543_v61 = vmax.f32 %v1538_v58, 0.0  ;;  %1956 = vmatprep.mubr.f32.mxu0 %v1544_v57 }
 0xca2   :  { %v1545_v62 = vadd.f32 %v1543_v61, %v1540_v60 }
 0xca4   :  { %1957 = vmatmul.mubr.f32.vlgmr.msra.gmra.mrb[20].mxu0 %v1545_v62 }
 0xd77   :  { %v1958_v63 = vpop.f32.mrb[20].mxu0 }
 0xd78   :  { %v1719_v2 = vpop.f32.mrb[21].mxu0 }
 0xd79   :  { %v2282_v3 = vpack.c.bf16 %v1958_v63, %v1719_v2 }
 0xd7b   :  { %2283 = vmatprep.subr.bf16.mxu1 %v2282_v3 }
 0xd7c   :  { %2285 = vmatpush3.bf16.msra.mxu1 %v2282_v3 }
 0xd7f   :  { %1964 = vmatmul.mubr.msk.f32.vlgmr.msra.gmra.mrb[36].mxu1 %vm234_vm0, %v2703_v9 }
 0xe52   :  { %v1965_v48 = vpop.f32.mrb[36].mxu1 }
 0xe53   :  { %v1807_v4 = vadd.f32 %v1965_v48, %v1846_v46  ;;  %v1801_v5 = vpop.f32.mrb[37].mxu1 }
 0xe54   :  { %v1802_v6 = vadd.f32 %v1846_v46, %v1801_v5 }
 0xe55   :  { %1811 = vst [vmem:[#allocation13 + $0x8] sm:$0xff] %v1807_v4 }
 0xe56   :  { %1810 = vst [vmem:[#allocation13] sm:$0xff] %v1802_v6 }
 0xe57   :  { %2449 = shalt.err (!%p2446_p10)
}
 0xe58   :  { %s2450_s6 = scalar_lea.hbm %s2736_s7, 256 }
 0xe59   :  { %p2451_p11 = scmp.ne.s32.totalorder %s2736_s7, %s2450_s6  ;;  %p2454_p12 = scmp.lt.u32.totalorder %s2450_s6, %s2736_s7 }
 0xe5b   :  { %p2456_p13 = pnand %p2454_p12, %p2451_p11 }
 0xe5d   :  { %2459 = shalt.err (!%p2456_p13)
}
 0xe5e   :  { %1823 = dma.vmem_to_hbm [thread:$0]  %s1818_s8, 256, %s2736_s7, [#allocation4], %s2472_s13, %s2472_s13, %s2473_s14  }
 0xe5f   :  { %2468 = dma.done.wait [#allocation4], 256  }
 0xe60   :  { %2469 = vsyncadd [#allocation4], 4294967040 }
 0xe61   :  { %1827 = vsyncpa [#allocation3], 1 }
 0xe62   :  { %1828 = vsyncpa [#allocation6], 1 }
 0xe63   :  { %1829 = vsyncpa [#allocation9], 1 }
 0xe64   :  { %1830 = vsyncpa [#allocation12], 1 }
 0xe65   :  { %1831 = vsyncpa [#allocation4], 1 }

</bundles_post_ra>
